<compile_context>
chip_gen: v6e
topology: v6e:2x2x1
jax: 0.10.0
libtpu: 0.0.40
codegen_flags: <defaults>
</compile_context>

<pallas_src>
import functools

import jax
import jax.numpy as jnp
from jax.experimental import pallas as pl
from jax.experimental.pallas import tpu as pltpu


def lstm_pool_fc_kernel(x_ref, wih_ref, whh_ref, b_ref, wfc_ref, bfc_ref,
                        out_ref, gx_ref, *, T, B, H):
    """Whole LSTM + max/avg pool + fc in a single kernel invocation.

    x_ref   : (T*B, C)   time-major flattened input
    wih_ref : (C, 4H)    W_ih^T
    whh_ref : (H, 4H)    W_hh^T
    b_ref   : (1, 4H)    b_ih + b_hh
    wfc_ref : (3H, OUT)  W_fc^T  (rows: [h_last | max_pool | avg_pool])
    bfc_ref : (1, OUT)
    out_ref : (B, OUT)
    gx_ref  : (T*B, 4H)  VMEM scratch for the hoisted input projection
    """
    # ---- Hoisted input projection: one batched MXU matmul, bias folded in. ----
    gx_ref[...] = (jnp.dot(x_ref[...], wih_ref[...],
                           preferred_element_type=jnp.float32)
                   + b_ref[...])

    whh = whh_ref[...]                              # (H, 4H), stays in vregs

    h = jnp.zeros((B, H), jnp.float32)
    c = jnp.zeros((B, H), jnp.float32)
    mx = jnp.full((B, H), -jnp.inf, jnp.float32)
    sm = jnp.zeros((B, H), jnp.float32)

    # ---- Serial recurrence: fully unrolled static loop (T is small/fixed). ----
    # Gate layout matches PyTorch LSTM: [i | f | g | o] along the 4H axis.
    for t in range(T):
        gates = (jnp.dot(h, whh, preferred_element_type=jnp.float32)
                 + gx_ref[t * B:(t + 1) * B, :])
        i_g = jax.nn.sigmoid(gates[:, 0 * H:1 * H])
        f_g = jax.nn.sigmoid(gates[:, 1 * H:2 * H])
        g_g = jnp.tanh(gates[:, 2 * H:3 * H])
        o_g = jax.nn.sigmoid(gates[:, 3 * H:4 * H])

        c = f_g * c + i_g * g_g
        h = o_g * jnp.tanh(c)

        mx = jnp.maximum(mx, h)
        sm = sm + h

    avg = sm * (1.0 / T)

    # fc on concat([h_last, max_pool, avg_pool]) via split weight rows
    # (avoids materializing the lane-boundary-crossing concat).
    out = (jnp.dot(h, wfc_ref[0 * H:1 * H, :], preferred_element_type=jnp.float32)
           + jnp.dot(mx, wfc_ref[1 * H:2 * H, :], preferred_element_type=jnp.float32)
           + jnp.dot(avg, wfc_ref[2 * H:3 * H, :], preferred_element_type=jnp.float32)
           + bfc_ref[...])
    out_ref[...] = out.astype(out_ref.dtype)
    # TODO(synk): nn.Dropout is identity in eval mode; training-mode dropout
    # would use pltpu.prng_seed / pltpu.stateful_bernoulli here.


def rnn_forward(x, w_ih, w_hh, b_ih, b_hh, w_fc, b_fc):
    """x: (B, C, T) float32.  Returns (B, output_size) float32."""
    B, C, T = x.shape
    H = w_hh.shape[1]
    out_size = w_fc.shape[0]

    # Layout plumbing only (no compute hoisted out of the kernel):
    x2d = jnp.transpose(x, (2, 0, 1)).reshape(T * B, C)   # time-major (T*B, C)
    wih_t = jnp.transpose(w_ih)                           # (C, 4H)
    whh_t = jnp.transpose(w_hh)                           # (H, 4H)
    b = (b_ih + b_hh)[None, :]                            # (1, 4H)
    wfc_t = jnp.transpose(w_fc)                           # (3H, out)
    bfc = b_fc[None, :]                                   # (1, out)

    kernel = functools.partial(lstm_pool_fc_kernel, T=T, B=B, H=H)
    vmem_spec = pl.BlockSpec(memory_space=pltpu.MemorySpace.VMEM)

    return pl.pallas_call(
        kernel,
        out_shape=jax.ShapeDtypeStruct((B, out_size), jnp.float32),
        in_specs=[vmem_spec] * 6,            # whole arrays resident in VMEM
        out_specs=vmem_spec,
        scratch_shapes=[
            pltpu.VMEM((T * B, 4 * H), jnp.float32),   # hoisted gate_x buffer
        ],
    )(x2d, wih_t, whh_t, b, wfc_t, bfc)


def rnn_forward_ref(x, w_ih, w_hh, b_ih, b_hh, w_fc, b_fc):
    """Pure-JAX reference matching PyTorch nn.LSTM(batch_first) semantics."""
    B, C, T = x.shape
    H = w_hh.shape[1]
    xs = jnp.transpose(x, (2, 0, 1))  # (T, B, C)

    def step(carry, x_t):
        h, c = carry
        gates = x_t @ w_ih.T + h @ w_hh.T + b_ih + b_hh
        i = jax.nn.sigmoid(gates[:, :H])
        f = jax.nn.sigmoid(gates[:, H:2 * H])
        g = jnp.tanh(gates[:, 2 * H:3 * H])
        o = jax.nn.sigmoid(gates[:, 3 * H:])
        c = f * c + i * g
        h = o * jnp.tanh(c)
        return (h, c), h

    (h_last, _), hs = jax.lax.scan(
        step, (jnp.zeros((B, H)), jnp.zeros((B, H))), xs)
    max_pool = hs.max(axis=0)
    avg_pool = hs.mean(axis=0)
    concat = jnp.concatenate([h_last, max_pool, avg_pool], axis=1)
    return concat @ w_fc.T + b_fc


if __name__ == "__main__":
    # Small config implied by the module: in_channels=4, seq=16, hidden=32,
    # output_dim=8, batch=2, single unidirectional LSTM layer.
    B, C, T = 2, 4, 16
    H = 32
    OUT = 8

    key = jax.random.PRNGKey(0)
    ks = jax.random.split(key, 7)
    k_init = 1.0 / jnp.sqrt(H)  # PyTorch LSTM/Linear uniform(-1/sqrt(H), ...)

    x = jax.random.normal(ks[0], (B, C, T), dtype=jnp.float32)
    w_ih = jax.random.uniform(ks[1], (4 * H, C), jnp.float32, -k_init, k_init)
    w_hh = jax.random.uniform(ks[2], (4 * H, H), jnp.float32, -k_init, k_init)
    b_ih = jax.random.uniform(ks[3], (4 * H,), jnp.float32, -k_init, k_init)
    b_hh = jax.random.uniform(ks[4], (4 * H,), jnp.float32, -k_init, k_init)
    k_fc = 1.0 / jnp.sqrt(3 * H)
    w_fc = jax.random.uniform(ks[5], (OUT, 3 * H), jnp.float32, -k_fc, k_fc)
    b_fc = jax.random.uniform(ks[6], (OUT,), jnp.float32, -k_fc, k_fc)

    out = rnn_forward(x, w_ih, w_hh, b_ih, b_hh, w_fc, b_fc)
    out = jax.block_until_ready(out)

    ref = rnn_forward_ref(x, w_ih, w_hh, b_ih, b_hh, w_fc, b_fc)
    assert out.shape == (B, OUT)
    assert jnp.allclose(out, ref, atol=2e-5, rtol=1e-4), (
        f"max abs err {jnp.max(jnp.abs(out - ref))}")
    print("KERNEL_OK")
</pallas_src>

<mosaic_0001>
module attributes {stable_mosaic.version = 11 : i64} {
  func.func @lstm_pool_fc_kernel(%arg0: memref<32x4xf32, #tpu.memory_space<vmem>>, %arg1: memref<4x128xf32, #tpu.memory_space<vmem>>, %arg2: memref<32x128xf32, #tpu.memory_space<vmem>>, %arg3: memref<1x128xf32, #tpu.memory_space<vmem>>, %arg4: memref<96x8xf32, #tpu.memory_space<vmem>>, %arg5: memref<1x8xf32, #tpu.memory_space<vmem>>, %arg6: memref<2x8xf32, #tpu.memory_space<vmem>>, %arg7: memref<32x128xf32, #tpu.memory_space<vmem>>) attributes {dimension_semantics = [], scalar_prefetch = 0 : i64, scratch_operands = 1 : i64, tpu.core_type = #tpu.core_type<tc>} {
    %c0 = arith.constant 0 : index
    %c0_0 = arith.constant 0 : index
    %0 = vector.load %arg0[%c0, %c0_0] : memref<32x4xf32, #tpu.memory_space<vmem>>, vector<32x4xf32>
    %c0_1 = arith.constant 0 : index
    %c0_2 = arith.constant 0 : index
    %1 = vector.load %arg1[%c0_1, %c0_2] : memref<4x128xf32, #tpu.memory_space<vmem>>, vector<4x128xf32>
    %cst = arith.constant dense<0.000000e+00> : vector<32x128xf32>
    %2 = tpu.matmul %0, %1, %cst {dimension_numbers = #tpu.dot_dimension_numbers<[1], [0], [0], [1], [0, 0, 1, 1], [], []>} : vector<32x4xf32>, vector<4x128xf32>, vector<32x128xf32> -> vector<32x128xf32>
    %c0_3 = arith.constant 0 : index
    %c0_4 = arith.constant 0 : index
    %3 = vector.load %arg3[%c0_3, %c0_4] : memref<1x128xf32, #tpu.memory_space<vmem>>, vector<1x128xf32>
    %4 = vector.broadcast %3 : vector<1x128xf32> to vector<32x128xf32>
    %5 = arith.addf %2, %4 : vector<32x128xf32>
    %c0_5 = arith.constant 0 : index
    %c0_6 = arith.constant 0 : index
    %6 = vector.load %arg7[%c0_5, %c0_6] : memref<32x128xf32, #tpu.memory_space<vmem>>, vector<32x128xf32>
    tpu.vector_store %arg7[%c0_5, %c0_6], %5 {strides = array<i32>} : memref<32x128xf32, #tpu.memory_space<vmem>>, vector<32x128xf32>,
    %c0_7 = arith.constant 0 : index
    %c0_8 = arith.constant 0 : index
    %7 = vector.load %arg2[%c0_7, %c0_8] : memref<32x128xf32, #tpu.memory_space<vmem>>, vector<32x128xf32>
    %cst_9 = arith.constant 0.000000e+00 : f32
    %8 = vector.broadcast %cst_9 : f32 to vector<2x32xf32>
    %cst_10 = arith.constant 0.000000e+00 : f32
    %9 = vector.broadcast %cst_10 : f32 to vector<2x32xf32>
    %cst_11 = arith.constant 0xFF800000 : f32
    %10 = vector.broadcast %cst_11 : f32 to vector<2x32xf32>
    %cst_12 = arith.constant 0.000000e+00 : f32
    %11 = vector.broadcast %cst_12 : f32 to vector<2x32xf32>
    %cst_13 = arith.constant dense<0.000000e+00> : vector<2x128xf32>
    %12 = tpu.matmul %8, %7, %cst_13 {dimension_numbers = #tpu.dot_dimension_numbers<[1], [0], [0], [1], [0, 0, 1, 1], [], []>} : vector<2x32xf32>, vector<32x128xf32>, vector<2x128xf32> -> vector<2x128xf32>
    %c0_14 = arith.constant 0 : index
    %c0_15 = arith.constant 0 : index
    %13 = vector.load %arg7[%c0_14, %c0_15] : memref<32x128xf32, #tpu.memory_space<vmem>>, vector<2x128xf32>
    %14 = arith.addf %12, %13 : vector<2x128xf32>
    %15 = vector.extract_strided_slice %14 {offsets = [0, 0], sizes = [2, 32], strides = [1, 1]} : vector<2x128xf32> to vector<2x32xf32>
    %16 = arith.negf %15 : vector<2x32xf32>
    %17 = math.exp %16 : vector<2x32xf32>
    %cst_16 = arith.constant 1.000000e+00 : f32
    %18 = vector.broadcast %cst_16 : f32 to vector<2x32xf32>
    %19 = arith.addf %18, %17 : vector<2x32xf32>
    %20 = arith.divf %18, %19 : vector<2x32xf32>
    %21 = vector.extract_strided_slice %14 {offsets = [0, 32], sizes = [2, 32], strides = [1, 1]} : vector<2x128xf32> to vector<2x32xf32>
    %22 = arith.negf %21 : vector<2x32xf32>
    %23 = math.exp %22 : vector<2x32xf32>
    %cst_17 = arith.constant 1.000000e+00 : f32
    %24 = vector.broadcast %cst_17 : f32 to vector<2x32xf32>
    %25 = arith.addf %24, %23 : vector<2x32xf32>
    %26 = arith.divf %24, %25 : vector<2x32xf32>
    %27 = vector.extract_strided_slice %14 {offsets = [0, 64], sizes = [2, 32], strides = [1, 1]} : vector<2x128xf32> to vector<2x32xf32>
    %28 = math.tanh %27 : vector<2x32xf32>
    %29 = vector.extract_strided_slice %14 {offsets = [0, 96], sizes = [2, 32], strides = [1, 1]} : vector<2x128xf32> to vector<2x32xf32>
    %30 = arith.negf %29 : vector<2x32xf32>
    %31 = math.exp %30 : vector<2x32xf32>
    %cst_18 = arith.constant 1.000000e+00 : f32
    %32 = vector.broadcast %cst_18 : f32 to vector<2x32xf32>
    %33 = arith.addf %32, %31 : vector<2x32xf32>
    %34 = arith.divf %32, %33 : vector<2x32xf32>
    %35 = arith.mulf %26, %9 : vector<2x32xf32>
    %36 = arith.mulf %20, %28 : vector<2x32xf32>
    %37 = arith.addf %35, %36 : vector<2x32xf32>
    %38 = math.tanh %37 : vector<2x32xf32>
    %39 = arith.mulf %34, %38 : vector<2x32xf32>
    %40 = arith.maximumf %10, %39 : vector<2x32xf32>
    %41 = arith.addf %11, %39 : vector<2x32xf32>
    %cst_19 = arith.constant dense<0.000000e+00> : vector<2x128xf32>
    %42 = tpu.matmul %39, %7, %cst_19 {dimension_numbers = #tpu.dot_dimension_numbers<[1], [0], [0], [1], [0, 0, 1, 1], [], []>} : vector<2x32xf32>, vector<32x128xf32>, vector<2x128xf32> -> vector<2x128xf32>
    %c2 = arith.constant 2 : index
    %c0_20 = arith.constant 0 : index
    %43 = vector.load %arg7[%c2, %c0_20] : memref<32x128xf32, #tpu.memory_space<vmem>>, vector<2x128xf32>
    %44 = arith.addf %42, %43 : vector<2x128xf32>
    %45 = vector.extract_strided_slice %44 {offsets = [0, 0], sizes = [2, 32], strides = [1, 1]} : vector<2x128xf32> to vector<2x32xf32>
    %46 = arith.negf %45 : vector<2x32xf32>
    %47 = math.exp %46 : vector<2x32xf32>
    %cst_21 = arith.constant 1.000000e+00 : f32
    %48 = vector.broadcast %cst_21 : f32 to vector<2x32xf32>
    %49 = arith.addf %48, %47 : vector<2x32xf32>
    %50 = arith.divf %48, %49 : vector<2x32xf32>
    %51 = vector.extract_strided_slice %44 {offsets = [0, 32], sizes = [2, 32], strides = [1, 1]} : vector<2x128xf32> to vector<2x32xf32>
    %52 = arith.negf %51 : vector<2x32xf32>
    %53 = math.exp %52 : vector<2x32xf32>
    %cst_22 = arith.constant 1.000000e+00 : f32
    %54 = vector.broadcast %cst_22 : f32 to vector<2x32xf32>
    %55 = arith.addf %54, %53 : vector<2x32xf32>
    %56 = arith.divf %54, %55 : vector<2x32xf32>
    %57 = vector.extract_strided_slice %44 {offsets = [0, 64], sizes = [2, 32], strides = [1, 1]} : vector<2x128xf32> to vector<2x32xf32>
    %58 = math.tanh %57 : vector<2x32xf32>
    %59 = vector.extract_strided_slice %44 {offsets = [0, 96], sizes = [2, 32], strides = [1, 1]} : vector<2x128xf32> to vector<2x32xf32>
    %60 = arith.negf %59 : vector<2x32xf32>
    %61 = math.exp %60 : vector<2x32xf32>
    %cst_23 = arith.constant 1.000000e+00 : f32
    %62 = vector.broadcast %cst_23 : f32 to vector<2x32xf32>
    %63 = arith.addf %62, %61 : vector<2x32xf32>
    %64 = arith.divf %62, %63 : vector<2x32xf32>
    %65 = arith.mulf %56, %37 : vector<2x32xf32>
    %66 = arith.mulf %50, %58 : vector<2x32xf32>
    %67 = arith.addf %65, %66 : vector<2x32xf32>
    %68 = math.tanh %67 : vector<2x32xf32>
    %69 = arith.mulf %64, %68 : vector<2x32xf32>
    %70 = arith.maximumf %40, %69 : vector<2x32xf32>
    %71 = arith.addf %41, %69 : vector<2x32xf32>
    %cst_24 = arith.constant dense<0.000000e+00> : vector<2x128xf32>
    %72 = tpu.matmul %69, %7, %cst_24 {dimension_numbers = #tpu.dot_dimension_numbers<[1], [0], [0], [1], [0, 0, 1, 1], [], []>} : vector<2x32xf32>, vector<32x128xf32>, vector<2x128xf32> -> vector<2x128xf32>
    %c4 = arith.constant 4 : index
    %c0_25 = arith.constant 0 : index
    %73 = vector.load %arg7[%c4, %c0_25] : memref<32x128xf32, #tpu.memory_space<vmem>>, vector<2x128xf32>
    %74 = arith.addf %72, %73 : vector<2x128xf32>
    %75 = vector.extract_strided_slice %74 {offsets = [0, 0], sizes = [2, 32], strides = [1, 1]} : vector<2x128xf32> to vector<2x32xf32>
    %76 = arith.negf %75 : vector<2x32xf32>
    %77 = math.exp %76 : vector<2x32xf32>
    %cst_26 = arith.constant 1.000000e+00 : f32
    %78 = vector.broadcast %cst_26 : f32 to vector<2x32xf32>
    %79 = arith.addf %78, %77 : vector<2x32xf32>
    %80 = arith.divf %78, %79 : vector<2x32xf32>
    %81 = vector.extract_strided_slice %74 {offsets = [0, 32], sizes = [2, 32], strides = [1, 1]} : vector<2x128xf32> to vector<2x32xf32>
    %82 = arith.negf %81 : vector<2x32xf32>
    %83 = math.exp %82 : vector<2x32xf32>
    %cst_27 = arith.constant 1.000000e+00 : f32
    %84 = vector.broadcast %cst_27 : f32 to vector<2x32xf32>
    %85 = arith.addf %84, %83 : vector<2x32xf32>
    %86 = arith.divf %84, %85 : vector<2x32xf32>
    %87 = vector.extract_strided_slice %74 {offsets = [0, 64], sizes = [2, 32], strides = [1, 1]} : vector<2x128xf32> to vector<2x32xf32>
    %88 = math.tanh %87 : vector<2x32xf32>
    %89 = vector.extract_strided_slice %74 {offsets = [0, 96], sizes = [2, 32], strides = [1, 1]} : vector<2x128xf32> to vector<2x32xf32>
    %90 = arith.negf %89 : vector<2x32xf32>
    %91 = math.exp %90 : vector<2x32xf32>
    %cst_28 = arith.constant 1.000000e+00 : f32
    %92 = vector.broadcast %cst_28 : f32 to vector<2x32xf32>
    %93 = arith.addf %92, %91 : vector<2x32xf32>
    %94 = arith.divf %92, %93 : vector<2x32xf32>
    %95 = arith.mulf %86, %67 : vector<2x32xf32>
    %96 = arith.mulf %80, %88 : vector<2x32xf32>
    %97 = arith.addf %95, %96 : vector<2x32xf32>
    %98 = math.tanh %97 : vector<2x32xf32>
    %99 = arith.mulf %94, %98 : vector<2x32xf32>
    %100 = arith.maximumf %70, %99 : vector<2x32xf32>
    %101 = arith.addf %71, %99 : vector<2x32xf32>
    %cst_29 = arith.constant dense<0.000000e+00> : vector<2x128xf32>
    %102 = tpu.matmul %99, %7, %cst_29 {dimension_numbers = #tpu.dot_dimension_numbers<[1], [0], [0], [1], [0, 0, 1, 1], [], []>} : vector<2x32xf32>, vector<32x128xf32>, vector<2x128xf32> -> vector<2x128xf32>
    %c6 = arith.constant 6 : index
    %c0_30 = arith.constant 0 : index
    %103 = vector.load %arg7[%c6, %c0_30] : memref<32x128xf32, #tpu.memory_space<vmem>>, vector<2x128xf32>
    %104 = arith.addf %102, %103 : vector<2x128xf32>
    %105 = vector.extract_strided_slice %104 {offsets = [0, 0], sizes = [2, 32], strides = [1, 1]} : vector<2x128xf32> to vector<2x32xf32>
    %106 = arith.negf %105 : vector<2x32xf32>
    %107 = math.exp %106 : vector<2x32xf32>
    %cst_31 = arith.constant 1.000000e+00 : f32
    %108 = vector.broadcast %cst_31 : f32 to vector<2x32xf32>
    %109 = arith.addf %108, %107 : vector<2x32xf32>
    %110 = arith.divf %108, %109 : vector<2x32xf32>
    %111 = vector.extract_strided_slice %104 {offsets = [0, 32], sizes = [2, 32], strides = [1, 1]} : vector<2x128xf32> to vector<2x32xf32>
    %112 = arith.negf %111 : vector<2x32xf32>
    %113 = math.exp %112 : vector<2x32xf32>
    %cst_32 = arith.constant 1.000000e+00 : f32
    %114 = vector.broadcast %cst_32 : f32 to vector<2x32xf32>
    %115 = arith.addf %114, %113 : vector<2x32xf32>
    %116 = arith.divf %114, %115 : vector<2x32xf32>
    %117 = vector.extract_strided_slice %104 {offsets = [0, 64], sizes = [2, 32], strides = [1, 1]} : vector<2x128xf32> to vector<2x32xf32>
    %118 = math.tanh %117 : vector<2x32xf32>
    %119 = vector.extract_strided_slice %104 {offsets = [0, 96], sizes = [2, 32], strides = [1, 1]} : vector<2x128xf32> to vector<2x32xf32>
    %120 = arith.negf %119 : vector<2x32xf32>
    %121 = math.exp %120 : vector<2x32xf32>
    %cst_33 = arith.constant 1.000000e+00 : f32
    %122 = vector.broadcast %cst_33 : f32 to vector<2x32xf32>
    %123 = arith.addf %122, %121 : vector<2x32xf32>
    %124 = arith.divf %122, %123 : vector<2x32xf32>
    %125 = arith.mulf %116, %97 : vector<2x32xf32>
    %126 = arith.mulf %110, %118 : vector<2x32xf32>
    %127 = arith.addf %125, %126 : vector<2x32xf32>
    %128 = math.tanh %127 : vector<2x32xf32>
    %129 = arith.mulf %124, %128 : vector<2x32xf32>
    %130 = arith.maximumf %100, %129 : vector<2x32xf32>
    %131 = arith.addf %101, %129 : vector<2x32xf32>
    %cst_34 = arith.constant dense<0.000000e+00> : vector<2x128xf32>
    %132 = tpu.matmul %129, %7, %cst_34 {dimension_numbers = #tpu.dot_dimension_numbers<[1], [0], [0], [1], [0, 0, 1, 1], [], []>} : vector<2x32xf32>, vector<32x128xf32>, vector<2x128xf32> -> vector<2x128xf32>
    %c8 = arith.constant 8 : index
    %c0_35 = arith.constant 0 : index
    %133 = vector.load %arg7[%c8, %c0_35] : memref<32x128xf32, #tpu.memory_space<vmem>>, vector<2x128xf32>
    %134 = arith.addf %132, %133 : vector<2x128xf32>
    %135 = vector.extract_strided_slice %134 {offsets = [0, 0], sizes = [2, 32], strides = [1, 1]} : vector<2x128xf32> to vector<2x32xf32>
    %136 = arith.negf %135 : vector<2x32xf32>
    %137 = math.exp %136 : vector<2x32xf32>
    %cst_36 = arith.constant 1.000000e+00 : f32
    %138 = vector.broadcast %cst_36 : f32 to vector<2x32xf32>
    %139 = arith.addf %138, %137 : vector<2x32xf32>
    %140 = arith.divf %138, %139 : vector<2x32xf32>
    %141 = vector.extract_strided_slice %134 {offsets = [0, 32], sizes = [2, 32], strides = [1, 1]} : vector<2x128xf32> to vector<2x32xf32>
    %142 = arith.negf %141 : vector<2x32xf32>
    %143 = math.exp %142 : vector<2x32xf32>
    %cst_37 = arith.constant 1.000000e+00 : f32
    %144 = vector.broadcast %cst_37 : f32 to vector<2x32xf32>
    %145 = arith.addf %144, %143 : vector<2x32xf32>
    %146 = arith.divf %144, %145 : vector<2x32xf32>
    %147 = vector.extract_strided_slice %134 {offsets = [0, 64], sizes = [2, 32], strides = [1, 1]} : vector<2x128xf32> to vector<2x32xf32>
    %148 = math.tanh %147 : vector<2x32xf32>
    %149 = vector.extract_strided_slice %134 {offsets = [0, 96], sizes = [2, 32], strides = [1, 1]} : vector<2x128xf32> to vector<2x32xf32>
    %150 = arith.negf %149 : vector<2x32xf32>
    %151 = math.exp %150 : vector<2x32xf32>
    %cst_38 = arith.constant 1.000000e+00 : f32
    %152 = vector.broadcast %cst_38 : f32 to vector<2x32xf32>
    %153 = arith.addf %152, %151 : vector<2x32xf32>
    %154 = arith.divf %152, %153 : vector<2x32xf32>
    %155 = arith.mulf %146, %127 : vector<2x32xf32>
    %156 = arith.mulf %140, %148 : vector<2x32xf32>
    %157 = arith.addf %155, %156 : vector<2x32xf32>
    %158 = math.tanh %157 : vector<2x32xf32>
    %159 = arith.mulf %154, %158 : vector<2x32xf32>
    %160 = arith.maximumf %130, %159 : vector<2x32xf32>
    %161 = arith.addf %131, %159 : vector<2x32xf32>
    %cst_39 = arith.constant dense<0.000000e+00> : vector<2x128xf32>
    %162 = tpu.matmul %159, %7, %cst_39 {dimension_numbers = #tpu.dot_dimension_numbers<[1], [0], [0], [1], [0, 0, 1, 1], [], []>} : vector<2x32xf32>, vector<32x128xf32>, vector<2x128xf32> -> vector<2x128xf32>
    %c10 = arith.constant 10 : index
    %c0_40 = arith.constant 0 : index
    %163 = vector.load %arg7[%c10, %c0_40] : memref<32x128xf32, #tpu.memory_space<vmem>>, vector<2x128xf32>
    %164 = arith.addf %162, %163 : vector<2x128xf32>
    %165 = vector.extract_strided_slice %164 {offsets = [0, 0], sizes = [2, 32], strides = [1, 1]} : vector<2x128xf32> to vector<2x32xf32>
    %166 = arith.negf %165 : vector<2x32xf32>
    %167 = math.exp %166 : vector<2x32xf32>
    %cst_41 = arith.constant 1.000000e+00 : f32
    %168 = vector.broadcast %cst_41 : f32 to vector<2x32xf32>
    %169 = arith.addf %168, %167 : vector<2x32xf32>
    %170 = arith.divf %168, %169 : vector<2x32xf32>
    %171 = vector.extract_strided_slice %164 {offsets = [0, 32], sizes = [2, 32], strides = [1, 1]} : vector<2x128xf32> to vector<2x32xf32>
    %172 = arith.negf %171 : vector<2x32xf32>
    %173 = math.exp %172 : vector<2x32xf32>
    %cst_42 = arith.constant 1.000000e+00 : f32
    %174 = vector.broadcast %cst_42 : f32 to vector<2x32xf32>
    %175 = arith.addf %174, %173 : vector<2x32xf32>
    %176 = arith.divf %174, %175 : vector<2x32xf32>
    %177 = vector.extract_strided_slice %164 {offsets = [0, 64], sizes = [2, 32], strides = [1, 1]} : vector<2x128xf32> to vector<2x32xf32>
    %178 = math.tanh %177 : vector<2x32xf32>
    %179 = vector.extract_strided_slice %164 {offsets = [0, 96], sizes = [2, 32], strides = [1, 1]} : vector<2x128xf32> to vector<2x32xf32>
    %180 = arith.negf %179 : vector<2x32xf32>
    %181 = math.exp %180 : vector<2x32xf32>
    %cst_43 = arith.constant 1.000000e+00 : f32
    %182 = vector.broadcast %cst_43 : f32 to vector<2x32xf32>
    %183 = arith.addf %182, %181 : vector<2x32xf32>
    %184 = arith.divf %182, %183 : vector<2x32xf32>
    %185 = arith.mulf %176, %157 : vector<2x32xf32>
    %186 = arith.mulf %170, %178 : vector<2x32xf32>
    %187 = arith.addf %185, %186 : vector<2x32xf32>
    %188 = math.tanh %187 : vector<2x32xf32>
    %189 = arith.mulf %184, %188 : vector<2x32xf32>
    %190 = arith.maximumf %160, %189 : vector<2x32xf32>
    %191 = arith.addf %161, %189 : vector<2x32xf32>
    %cst_44 = arith.constant dense<0.000000e+00> : vector<2x128xf32>
    %192 = tpu.matmul %189, %7, %cst_44 {dimension_numbers = #tpu.dot_dimension_numbers<[1], [0], [0], [1], [0, 0, 1, 1], [], []>} : vector<2x32xf32>, vector<32x128xf32>, vector<2x128xf32> -> vector<2x128xf32>
    %c12 = arith.constant 12 : index
    %c0_45 = arith.constant 0 : index
    %193 = vector.load %arg7[%c12, %c0_45] : memref<32x128xf32, #tpu.memory_space<vmem>>, vector<2x128xf32>
    %194 = arith.addf %192, %193 : vector<2x128xf32>
    %195 = vector.extract_strided_slice %194 {offsets = [0, 0], sizes = [2, 32], strides = [1, 1]} : vector<2x128xf32> to vector<2x32xf32>
    %196 = arith.negf %195 : vector<2x32xf32>
    %197 = math.exp %196 : vector<2x32xf32>
    %cst_46 = arith.constant 1.000000e+00 : f32
    %198 = vector.broadcast %cst_46 : f32 to vector<2x32xf32>
    %199 = arith.addf %198, %197 : vector<2x32xf32>
    %200 = arith.divf %198, %199 : vector<2x32xf32>
    %201 = vector.extract_strided_slice %194 {offsets = [0, 32], sizes = [2, 32], strides = [1, 1]} : vector<2x128xf32> to vector<2x32xf32>
    %202 = arith.negf %201 : vector<2x32xf32>
    %203 = math.exp %202 : vector<2x32xf32>
    %cst_47 = arith.constant 1.000000e+00 : f32
    %204 = vector.broadcast %cst_47 : f32 to vector<2x32xf32>
    %205 = arith.addf %204, %203 : vector<2x32xf32>
    %206 = arith.divf %204, %205 : vector<2x32xf32>
    %207 = vector.extract_strided_slice %194 {offsets = [0, 64], sizes = [2, 32], strides = [1, 1]} : vector<2x128xf32> to vector<2x32xf32>
    %208 = math.tanh %207 : vector<2x32xf32>
    %209 = vector.extract_strided_slice %194 {offsets = [0, 96], sizes = [2, 32], strides = [1, 1]} : vector<2x128xf32> to vector<2x32xf32>
    %210 = arith.negf %209 : vector<2x32xf32>
    %211 = math.exp %210 : vector<2x32xf32>
    %cst_48 = arith.constant 1.000000e+00 : f32
    %212 = vector.broadcast %cst_48 : f32 to vector<2x32xf32>
    %213 = arith.addf %212, %211 : vector<2x32xf32>
    %214 = arith.divf %212, %213 : vector<2x32xf32>
    %215 = arith.mulf %206, %187 : vector<2x32xf32>
    %216 = arith.mulf %200, %208 : vector<2x32xf32>
    %217 = arith.addf %215, %216 : vector<2x32xf32>
    %218 = math.tanh %217 : vector<2x32xf32>
    %219 = arith.mulf %214, %218 : vector<2x32xf32>
    %220 = arith.maximumf %190, %219 : vector<2x32xf32>
    %221 = arith.addf %191, %219 : vector<2x32xf32>
    %cst_49 = arith.constant dense<0.000000e+00> : vector<2x128xf32>
    %222 = tpu.matmul %219, %7, %cst_49 {dimension_numbers = #tpu.dot_dimension_numbers<[1], [0], [0], [1], [0, 0, 1, 1], [], []>} : vector<2x32xf32>, vector<32x128xf32>, vector<2x128xf32> -> vector<2x128xf32>
    %c14 = arith.constant 14 : index
    %c0_50 = arith.constant 0 : index
    %223 = vector.load %arg7[%c14, %c0_50] : memref<32x128xf32, #tpu.memory_space<vmem>>, vector<2x128xf32>
    %224 = arith.addf %222, %223 : vector<2x128xf32>
    %225 = vector.extract_strided_slice %224 {offsets = [0, 0], sizes = [2, 32], strides = [1, 1]} : vector<2x128xf32> to vector<2x32xf32>
    %226 = arith.negf %225 : vector<2x32xf32>
    %227 = math.exp %226 : vector<2x32xf32>
    %cst_51 = arith.constant 1.000000e+00 : f32
    %228 = vector.broadcast %cst_51 : f32 to vector<2x32xf32>
    %229 = arith.addf %228, %227 : vector<2x32xf32>
    %230 = arith.divf %228, %229 : vector<2x32xf32>
    %231 = vector.extract_strided_slice %224 {offsets = [0, 32], sizes = [2, 32], strides = [1, 1]} : vector<2x128xf32> to vector<2x32xf32>
    %232 = arith.negf %231 : vector<2x32xf32>
    %233 = math.exp %232 : vector<2x32xf32>
    %cst_52 = arith.constant 1.000000e+00 : f32
    %234 = vector.broadcast %cst_52 : f32 to vector<2x32xf32>
    %235 = arith.addf %234, %233 : vector<2x32xf32>
    %236 = arith.divf %234, %235 : vector<2x32xf32>
    %237 = vector.extract_strided_slice %224 {offsets = [0, 64], sizes = [2, 32], strides = [1, 1]} : vector<2x128xf32> to vector<2x32xf32>
    %238 = math.tanh %237 : vector<2x32xf32>
    %239 = vector.extract_strided_slice %224 {offsets = [0, 96], sizes = [2, 32], strides = [1, 1]} : vector<2x128xf32> to vector<2x32xf32>
    %240 = arith.negf %239 : vector<2x32xf32>
    %241 = math.exp %240 : vector<2x32xf32>
    %cst_53 = arith.constant 1.000000e+00 : f32
    %242 = vector.broadcast %cst_53 : f32 to vector<2x32xf32>
    %243 = arith.addf %242, %241 : vector<2x32xf32>
    %244 = arith.divf %242, %243 : vector<2x32xf32>
    %245 = arith.mulf %236, %217 : vector<2x32xf32>
    %246 = arith.mulf %230, %238 : vector<2x32xf32>
    %247 = arith.addf %245, %246 : vector<2x32xf32>
    %248 = math.tanh %247 : vector<2x32xf32>
    %249 = arith.mulf %244, %248 : vector<2x32xf32>
    %250 = arith.maximumf %220, %249 : vector<2x32xf32>
    %251 = arith.addf %221, %249 : vector<2x32xf32>
    %cst_54 = arith.constant dense<0.000000e+00> : vector<2x128xf32>
    %252 = tpu.matmul %249, %7, %cst_54 {dimension_numbers = #tpu.dot_dimension_numbers<[1], [0], [0], [1], [0, 0, 1, 1], [], []>} : vector<2x32xf32>, vector<32x128xf32>, vector<2x128xf32> -> vector<2x128xf32>
    %c16 = arith.constant 16 : index
    %c0_55 = arith.constant 0 : index
    %253 = vector.load %arg7[%c16, %c0_55] : memref<32x128xf32, #tpu.memory_space<vmem>>, vector<2x128xf32>
    %254 = arith.addf %252, %253 : vector<2x128xf32>
    %255 = vector.extract_strided_slice %254 {offsets = [0, 0], sizes = [2, 32], strides = [1, 1]} : vector<2x128xf32> to vector<2x32xf32>
    %256 = arith.negf %255 : vector<2x32xf32>
    %257 = math.exp %256 : vector<2x32xf32>
    %cst_56 = arith.constant 1.000000e+00 : f32
    %258 = vector.broadcast %cst_56 : f32 to vector<2x32xf32>
    %259 = arith.addf %258, %257 : vector<2x32xf32>
    %260 = arith.divf %258, %259 : vector<2x32xf32>
    %261 = vector.extract_strided_slice %254 {offsets = [0, 32], sizes = [2, 32], strides = [1, 1]} : vector<2x128xf32> to vector<2x32xf32>
    %262 = arith.negf %261 : vector<2x32xf32>
    %263 = math.exp %262 : vector<2x32xf32>
    %cst_57 = arith.constant 1.000000e+00 : f32
    %264 = vector.broadcast %cst_57 : f32 to vector<2x32xf32>
    %265 = arith.addf %264, %263 : vector<2x32xf32>
    %266 = arith.divf %264, %265 : vector<2x32xf32>
    %267 = vector.extract_strided_slice %254 {offsets = [0, 64], sizes = [2, 32], strides = [1, 1]} : vector<2x128xf32> to vector<2x32xf32>
    %268 = math.tanh %267 : vector<2x32xf32>
    %269 = vector.extract_strided_slice %254 {offsets = [0, 96], sizes = [2, 32], strides = [1, 1]} : vector<2x128xf32> to vector<2x32xf32>
    %270 = arith.negf %269 : vector<2x32xf32>
    %271 = math.exp %270 : vector<2x32xf32>
    %cst_58 = arith.constant 1.000000e+00 : f32
    %272 = vector.broadcast %cst_58 : f32 to vector<2x32xf32>
    %273 = arith.addf %272, %271 : vector<2x32xf32>
    %274 = arith.divf %272, %273 : vector<2x32xf32>
    %275 = arith.mulf %266, %247 : vector<2x32xf32>
    %276 = arith.mulf %260, %268 : vector<2x32xf32>
    %277 = arith.addf %275, %276 : vector<2x32xf32>
    %278 = math.tanh %277 : vector<2x32xf32>
    %279 = arith.mulf %274, %278 : vector<2x32xf32>
    %280 = arith.maximumf %250, %279 : vector<2x32xf32>
    %281 = arith.addf %251, %279 : vector<2x32xf32>
    %cst_59 = arith.constant dense<0.000000e+00> : vector<2x128xf32>
    %282 = tpu.matmul %279, %7, %cst_59 {dimension_numbers = #tpu.dot_dimension_numbers<[1], [0], [0], [1], [0, 0, 1, 1], [], []>} : vector<2x32xf32>, vector<32x128xf32>, vector<2x128xf32> -> vector<2x128xf32>
    %c18 = arith.constant 18 : index
    %c0_60 = arith.constant 0 : index
    %283 = vector.load %arg7[%c18, %c0_60] : memref<32x128xf32, #tpu.memory_space<vmem>>, vector<2x128xf32>
    %284 = arith.addf %282, %283 : vector<2x128xf32>
    %285 = vector.extract_strided_slice %284 {offsets = [0, 0], sizes = [2, 32], strides = [1, 1]} : vector<2x128xf32> to vector<2x32xf32>
    %286 = arith.negf %285 : vector<2x32xf32>
    %287 = math.exp %286 : vector<2x32xf32>
    %cst_61 = arith.constant 1.000000e+00 : f32
    %288 = vector.broadcast %cst_61 : f32 to vector<2x32xf32>
    %289 = arith.addf %288, %287 : vector<2x32xf32>
    %290 = arith.divf %288, %289 : vector<2x32xf32>
    %291 = vector.extract_strided_slice %284 {offsets = [0, 32], sizes = [2, 32], strides = [1, 1]} : vector<2x128xf32> to vector<2x32xf32>
    %292 = arith.negf %291 : vector<2x32xf32>
    %293 = math.exp %292 : vector<2x32xf32>
    %cst_62 = arith.constant 1.000000e+00 : f32
    %294 = vector.broadcast %cst_62 : f32 to vector<2x32xf32>
    %295 = arith.addf %294, %293 : vector<2x32xf32>
    %296 = arith.divf %294, %295 : vector<2x32xf32>
    %297 = vector.extract_strided_slice %284 {offsets = [0, 64], sizes = [2, 32], strides = [1, 1]} : vector<2x128xf32> to vector<2x32xf32>
    %298 = math.tanh %297 : vector<2x32xf32>
    %299 = vector.extract_strided_slice %284 {offsets = [0, 96], sizes = [2, 32], strides = [1, 1]} : vector<2x128xf32> to vector<2x32xf32>
    %300 = arith.negf %299 : vector<2x32xf32>
    %301 = math.exp %300 : vector<2x32xf32>
    %cst_63 = arith.constant 1.000000e+00 : f32
    %302 = vector.broadcast %cst_63 : f32 to vector<2x32xf32>
    %303 = arith.addf %302, %301 : vector<2x32xf32>
    %304 = arith.divf %302, %303 : vector<2x32xf32>
    %305 = arith.mulf %296, %277 : vector<2x32xf32>
    %306 = arith.mulf %290, %298 : vector<2x32xf32>
    %307 = arith.addf %305, %306 : vector<2x32xf32>
    %308 = math.tanh %307 : vector<2x32xf32>
    %309 = arith.mulf %304, %308 : vector<2x32xf32>
    %310 = arith.maximumf %280, %309 : vector<2x32xf32>
    %311 = arith.addf %281, %309 : vector<2x32xf32>
    %cst_64 = arith.constant dense<0.000000e+00> : vector<2x128xf32>
    %312 = tpu.matmul %309, %7, %cst_64 {dimension_numbers = #tpu.dot_dimension_numbers<[1], [0], [0], [1], [0, 0, 1, 1], [], []>} : vector<2x32xf32>, vector<32x128xf32>, vector<2x128xf32> -> vector<2x128xf32>
    %c20 = arith.constant 20 : index
    %c0_65 = arith.constant 0 : index
    %313 = vector.load %arg7[%c20, %c0_65] : memref<32x128xf32, #tpu.memory_space<vmem>>, vector<2x128xf32>
    %314 = arith.addf %312, %313 : vector<2x128xf32>
    %315 = vector.extract_strided_slice %314 {offsets = [0, 0], sizes = [2, 32], strides = [1, 1]} : vector<2x128xf32> to vector<2x32xf32>
    %316 = arith.negf %315 : vector<2x32xf32>
    %317 = math.exp %316 : vector<2x32xf32>
    %cst_66 = arith.constant 1.000000e+00 : f32
    %318 = vector.broadcast %cst_66 : f32 to vector<2x32xf32>
    %319 = arith.addf %318, %317 : vector<2x32xf32>
    %320 = arith.divf %318, %319 : vector<2x32xf32>
    %321 = vector.extract_strided_slice %314 {offsets = [0, 32], sizes = [2, 32], strides = [1, 1]} : vector<2x128xf32> to vector<2x32xf32>
    %322 = arith.negf %321 : vector<2x32xf32>
    %323 = math.exp %322 : vector<2x32xf32>
    %cst_67 = arith.constant 1.000000e+00 : f32
    %324 = vector.broadcast %cst_67 : f32 to vector<2x32xf32>
    %325 = arith.addf %324, %323 : vector<2x32xf32>
    %326 = arith.divf %324, %325 : vector<2x32xf32>
    %327 = vector.extract_strided_slice %314 {offsets = [0, 64], sizes = [2, 32], strides = [1, 1]} : vector<2x128xf32> to vector<2x32xf32>
    %328 = math.tanh %327 : vector<2x32xf32>
    %329 = vector.extract_strided_slice %314 {offsets = [0, 96], sizes = [2, 32], strides = [1, 1]} : vector<2x128xf32> to vector<2x32xf32>
    %330 = arith.negf %329 : vector<2x32xf32>
    %331 = math.exp %330 : vector<2x32xf32>
    %cst_68 = arith.constant 1.000000e+00 : f32
    %332 = vector.broadcast %cst_68 : f32 to vector<2x32xf32>
    %333 = arith.addf %332, %331 : vector<2x32xf32>
    %334 = arith.divf %332, %333 : vector<2x32xf32>
    %335 = arith.mulf %326, %307 : vector<2x32xf32>
    %336 = arith.mulf %320, %328 : vector<2x32xf32>
    %337 = arith.addf %335, %336 : vector<2x32xf32>
    %338 = math.tanh %337 : vector<2x32xf32>
    %339 = arith.mulf %334, %338 : vector<2x32xf32>
    %340 = arith.maximumf %310, %339 : vector<2x32xf32>
    %341 = arith.addf %311, %339 : vector<2x32xf32>
    %cst_69 = arith.constant dense<0.000000e+00> : vector<2x128xf32>
    %342 = tpu.matmul %339, %7, %cst_69 {dimension_numbers = #tpu.dot_dimension_numbers<[1], [0], [0], [1], [0, 0, 1, 1], [], []>} : vector<2x32xf32>, vector<32x128xf32>, vector<2x128xf32> -> vector<2x128xf32>
    %c22 = arith.constant 22 : index
    %c0_70 = arith.constant 0 : index
    %343 = vector.load %arg7[%c22, %c0_70] : memref<32x128xf32, #tpu.memory_space<vmem>>, vector<2x128xf32>
    %344 = arith.addf %342, %343 : vector<2x128xf32>
    %345 = vector.extract_strided_slice %344 {offsets = [0, 0], sizes = [2, 32], strides = [1, 1]} : vector<2x128xf32> to vector<2x32xf32>
    %346 = arith.negf %345 : vector<2x32xf32>
    %347 = math.exp %346 : vector<2x32xf32>
    %cst_71 = arith.constant 1.000000e+00 : f32
    %348 = vector.broadcast %cst_71 : f32 to vector<2x32xf32>
    %349 = arith.addf %348, %347 : vector<2x32xf32>
    %350 = arith.divf %348, %349 : vector<2x32xf32>
    %351 = vector.extract_strided_slice %344 {offsets = [0, 32], sizes = [2, 32], strides = [1, 1]} : vector<2x128xf32> to vector<2x32xf32>
    %352 = arith.negf %351 : vector<2x32xf32>
    %353 = math.exp %352 : vector<2x32xf32>
    %cst_72 = arith.constant 1.000000e+00 : f32
    %354 = vector.broadcast %cst_72 : f32 to vector<2x32xf32>
    %355 = arith.addf %354, %353 : vector<2x32xf32>
    %356 = arith.divf %354, %355 : vector<2x32xf32>
    %357 = vector.extract_strided_slice %344 {offsets = [0, 64], sizes = [2, 32], strides = [1, 1]} : vector<2x128xf32> to vector<2x32xf32>
    %358 = math.tanh %357 : vector<2x32xf32>
    %359 = vector.extract_strided_slice %344 {offsets = [0, 96], sizes = [2, 32], strides = [1, 1]} : vector<2x128xf32> to vector<2x32xf32>
    %360 = arith.negf %359 : vector<2x32xf32>
    %361 = math.exp %360 : vector<2x32xf32>
    %cst_73 = arith.constant 1.000000e+00 : f32
    %362 = vector.broadcast %cst_73 : f32 to vector<2x32xf32>
    %363 = arith.addf %362, %361 : vector<2x32xf32>
    %364 = arith.divf %362, %363 : vector<2x32xf32>
    %365 = arith.mulf %356, %337 : vector<2x32xf32>
    %366 = arith.mulf %350, %358 : vector<2x32xf32>
    %367 = arith.addf %365, %366 : vector<2x32xf32>
    %368 = math.tanh %367 : vector<2x32xf32>
    %369 = arith.mulf %364, %368 : vector<2x32xf32>
    %370 = arith.maximumf %340, %369 : vector<2x32xf32>
    %371 = arith.addf %341, %369 : vector<2x32xf32>
    %cst_74 = arith.constant dense<0.000000e+00> : vector<2x128xf32>
    %372 = tpu.matmul %369, %7, %cst_74 {dimension_numbers = #tpu.dot_dimension_numbers<[1], [0], [0], [1], [0, 0, 1, 1], [], []>} : vector<2x32xf32>, vector<32x128xf32>, vector<2x128xf32> -> vector<2x128xf32>
    %c24 = arith.constant 24 : index
    %c0_75 = arith.constant 0 : index
    %373 = vector.load %arg7[%c24, %c0_75] : memref<32x128xf32, #tpu.memory_space<vmem>>, vector<2x128xf32>
    %374 = arith.addf %372, %373 : vector<2x128xf32>
    %375 = vector.extract_strided_slice %374 {offsets = [0, 0], sizes = [2, 32], strides = [1, 1]} : vector<2x128xf32> to vector<2x32xf32>
    %376 = arith.negf %375 : vector<2x32xf32>
    %377 = math.exp %376 : vector<2x32xf32>
    %cst_76 = arith.constant 1.000000e+00 : f32
    %378 = vector.broadcast %cst_76 : f32 to vector<2x32xf32>
    %379 = arith.addf %378, %377 : vector<2x32xf32>
    %380 = arith.divf %378, %379 : vector<2x32xf32>
    %381 = vector.extract_strided_slice %374 {offsets = [0, 32], sizes = [2, 32], strides = [1, 1]} : vector<2x128xf32> to vector<2x32xf32>
    %382 = arith.negf %381 : vector<2x32xf32>
    %383 = math.exp %382 : vector<2x32xf32>
    %cst_77 = arith.constant 1.000000e+00 : f32
    %384 = vector.broadcast %cst_77 : f32 to vector<2x32xf32>
    %385 = arith.addf %384, %383 : vector<2x32xf32>
    %386 = arith.divf %384, %385 : vector<2x32xf32>
    %387 = vector.extract_strided_slice %374 {offsets = [0, 64], sizes = [2, 32], strides = [1, 1]} : vector<2x128xf32> to vector<2x32xf32>
    %388 = math.tanh %387 : vector<2x32xf32>
    %389 = vector.extract_strided_slice %374 {offsets = [0, 96], sizes = [2, 32], strides = [1, 1]} : vector<2x128xf32> to vector<2x32xf32>
    %390 = arith.negf %389 : vector<2x32xf32>
    %391 = math.exp %390 : vector<2x32xf32>
    %cst_78 = arith.constant 1.000000e+00 : f32
    %392 = vector.broadcast %cst_78 : f32 to vector<2x32xf32>
    %393 = arith.addf %392, %391 : vector<2x32xf32>
    %394 = arith.divf %392, %393 : vector<2x32xf32>
    %395 = arith.mulf %386, %367 : vector<2x32xf32>
    %396 = arith.mulf %380, %388 : vector<2x32xf32>
    %397 = arith.addf %395, %396 : vector<2x32xf32>
    %398 = math.tanh %397 : vector<2x32xf32>
    %399 = arith.mulf %394, %398 : vector<2x32xf32>
    %400 = arith.maximumf %370, %399 : vector<2x32xf32>
    %401 = arith.addf %371, %399 : vector<2x32xf32>
    %cst_79 = arith.constant dense<0.000000e+00> : vector<2x128xf32>
    %402 = tpu.matmul %399, %7, %cst_79 {dimension_numbers = #tpu.dot_dimension_numbers<[1], [0], [0], [1], [0, 0, 1, 1], [], []>} : vector<2x32xf32>, vector<32x128xf32>, vector<2x128xf32> -> vector<2x128xf32>
    %c26 = arith.constant 26 : index
    %c0_80 = arith.constant 0 : index
    %403 = vector.load %arg7[%c26, %c0_80] : memref<32x128xf32, #tpu.memory_space<vmem>>, vector<2x128xf32>
    %404 = arith.addf %402, %403 : vector<2x128xf32>
    %405 = vector.extract_strided_slice %404 {offsets = [0, 0], sizes = [2, 32], strides = [1, 1]} : vector<2x128xf32> to vector<2x32xf32>
    %406 = arith.negf %405 : vector<2x32xf32>
    %407 = math.exp %406 : vector<2x32xf32>
    %cst_81 = arith.constant 1.000000e+00 : f32
    %408 = vector.broadcast %cst_81 : f32 to vector<2x32xf32>
    %409 = arith.addf %408, %407 : vector<2x32xf32>
    %410 = arith.divf %408, %409 : vector<2x32xf32>
    %411 = vector.extract_strided_slice %404 {offsets = [0, 32], sizes = [2, 32], strides = [1, 1]} : vector<2x128xf32> to vector<2x32xf32>
    %412 = arith.negf %411 : vector<2x32xf32>
    %413 = math.exp %412 : vector<2x32xf32>
    %cst_82 = arith.constant 1.000000e+00 : f32
    %414 = vector.broadcast %cst_82 : f32 to vector<2x32xf32>
    %415 = arith.addf %414, %413 : vector<2x32xf32>
    %416 = arith.divf %414, %415 : vector<2x32xf32>
    %417 = vector.extract_strided_slice %404 {offsets = [0, 64], sizes = [2, 32], strides = [1, 1]} : vector<2x128xf32> to vector<2x32xf32>
    %418 = math.tanh %417 : vector<2x32xf32>
    %419 = vector.extract_strided_slice %404 {offsets = [0, 96], sizes = [2, 32], strides = [1, 1]} : vector<2x128xf32> to vector<2x32xf32>
    %420 = arith.negf %419 : vector<2x32xf32>
    %421 = math.exp %420 : vector<2x32xf32>
    %cst_83 = arith.constant 1.000000e+00 : f32
    %422 = vector.broadcast %cst_83 : f32 to vector<2x32xf32>
    %423 = arith.addf %422, %421 : vector<2x32xf32>
    %424 = arith.divf %422, %423 : vector<2x32xf32>
    %425 = arith.mulf %416, %397 : vector<2x32xf32>
    %426 = arith.mulf %410, %418 : vector<2x32xf32>
    %427 = arith.addf %425, %426 : vector<2x32xf32>
    %428 = math.tanh %427 : vector<2x32xf32>
    %429 = arith.mulf %424, %428 : vector<2x32xf32>
    %430 = arith.maximumf %400, %429 : vector<2x32xf32>
    %431 = arith.addf %401, %429 : vector<2x32xf32>
    %cst_84 = arith.constant dense<0.000000e+00> : vector<2x128xf32>
    %432 = tpu.matmul %429, %7, %cst_84 {dimension_numbers = #tpu.dot_dimension_numbers<[1], [0], [0], [1], [0, 0, 1, 1], [], []>} : vector<2x32xf32>, vector<32x128xf32>, vector<2x128xf32> -> vector<2x128xf32>
    %c28 = arith.constant 28 : index
    %c0_85 = arith.constant 0 : index
    %433 = vector.load %arg7[%c28, %c0_85] : memref<32x128xf32, #tpu.memory_space<vmem>>, vector<2x128xf32>
    %434 = arith.addf %432, %433 : vector<2x128xf32>
    %435 = vector.extract_strided_slice %434 {offsets = [0, 0], sizes = [2, 32], strides = [1, 1]} : vector<2x128xf32> to vector<2x32xf32>
    %436 = arith.negf %435 : vector<2x32xf32>
    %437 = math.exp %436 : vector<2x32xf32>
    %cst_86 = arith.constant 1.000000e+00 : f32
    %438 = vector.broadcast %cst_86 : f32 to vector<2x32xf32>
    %439 = arith.addf %438, %437 : vector<2x32xf32>
    %440 = arith.divf %438, %439 : vector<2x32xf32>
    %441 = vector.extract_strided_slice %434 {offsets = [0, 32], sizes = [2, 32], strides = [1, 1]} : vector<2x128xf32> to vector<2x32xf32>
    %442 = arith.negf %441 : vector<2x32xf32>
    %443 = math.exp %442 : vector<2x32xf32>
    %cst_87 = arith.constant 1.000000e+00 : f32
    %444 = vector.broadcast %cst_87 : f32 to vector<2x32xf32>
    %445 = arith.addf %444, %443 : vector<2x32xf32>
    %446 = arith.divf %444, %445 : vector<2x32xf32>
    %447 = vector.extract_strided_slice %434 {offsets = [0, 64], sizes = [2, 32], strides = [1, 1]} : vector<2x128xf32> to vector<2x32xf32>
    %448 = math.tanh %447 : vector<2x32xf32>
    %449 = vector.extract_strided_slice %434 {offsets = [0, 96], sizes = [2, 32], strides = [1, 1]} : vector<2x128xf32> to vector<2x32xf32>
    %450 = arith.negf %449 : vector<2x32xf32>
    %451 = math.exp %450 : vector<2x32xf32>
    %cst_88 = arith.constant 1.000000e+00 : f32
    %452 = vector.broadcast %cst_88 : f32 to vector<2x32xf32>
    %453 = arith.addf %452, %451 : vector<2x32xf32>
    %454 = arith.divf %452, %453 : vector<2x32xf32>
    %455 = arith.mulf %446, %427 : vector<2x32xf32>
    %456 = arith.mulf %440, %448 : vector<2x32xf32>
    %457 = arith.addf %455, %456 : vector<2x32xf32>
    %458 = math.tanh %457 : vector<2x32xf32>
    %459 = arith.mulf %454, %458 : vector<2x32xf32>
    %460 = arith.maximumf %430, %459 : vector<2x32xf32>
    %461 = arith.addf %431, %459 : vector<2x32xf32>
    %cst_89 = arith.constant dense<0.000000e+00> : vector<2x128xf32>
    %462 = tpu.matmul %459, %7, %cst_89 {dimension_numbers = #tpu.dot_dimension_numbers<[1], [0], [0], [1], [0, 0, 1, 1], [], []>} : vector<2x32xf32>, vector<32x128xf32>, vector<2x128xf32> -> vector<2x128xf32>
    %c30 = arith.constant 30 : index
    %c0_90 = arith.constant 0 : index
    %463 = vector.load %arg7[%c30, %c0_90] : memref<32x128xf32, #tpu.memory_space<vmem>>, vector<2x128xf32>
    %464 = arith.addf %462, %463 : vector<2x128xf32>
    %465 = vector.extract_strided_slice %464 {offsets = [0, 0], sizes = [2, 32], strides = [1, 1]} : vector<2x128xf32> to vector<2x32xf32>
    %466 = arith.negf %465 : vector<2x32xf32>
    %467 = math.exp %466 : vector<2x32xf32>
    %cst_91 = arith.constant 1.000000e+00 : f32
    %468 = vector.broadcast %cst_91 : f32 to vector<2x32xf32>
    %469 = arith.addf %468, %467 : vector<2x32xf32>
    %470 = arith.divf %468, %469 : vector<2x32xf32>
    %471 = vector.extract_strided_slice %464 {offsets = [0, 32], sizes = [2, 32], strides = [1, 1]} : vector<2x128xf32> to vector<2x32xf32>
    %472 = arith.negf %471 : vector<2x32xf32>
    %473 = math.exp %472 : vector<2x32xf32>
    %cst_92 = arith.constant 1.000000e+00 : f32
    %474 = vector.broadcast %cst_92 : f32 to vector<2x32xf32>
    %475 = arith.addf %474, %473 : vector<2x32xf32>
    %476 = arith.divf %474, %475 : vector<2x32xf32>
    %477 = vector.extract_strided_slice %464 {offsets = [0, 64], sizes = [2, 32], strides = [1, 1]} : vector<2x128xf32> to vector<2x32xf32>
    %478 = math.tanh %477 : vector<2x32xf32>
    %479 = vector.extract_strided_slice %464 {offsets = [0, 96], sizes = [2, 32], strides = [1, 1]} : vector<2x128xf32> to vector<2x32xf32>
    %480 = arith.negf %479 : vector<2x32xf32>
    %481 = math.exp %480 : vector<2x32xf32>
    %cst_93 = arith.constant 1.000000e+00 : f32
    %482 = vector.broadcast %cst_93 : f32 to vector<2x32xf32>
    %483 = arith.addf %482, %481 : vector<2x32xf32>
    %484 = arith.divf %482, %483 : vector<2x32xf32>
    %485 = arith.mulf %476, %457 : vector<2x32xf32>
    %486 = arith.mulf %470, %478 : vector<2x32xf32>
    %487 = arith.addf %485, %486 : vector<2x32xf32>
    %488 = math.tanh %487 : vector<2x32xf32>
    %489 = arith.mulf %484, %488 : vector<2x32xf32>
    %490 = arith.maximumf %460, %489 : vector<2x32xf32>
    %491 = arith.addf %461, %489 : vector<2x32xf32>
    %cst_94 = arith.constant 6.250000e-02 : f32
    %492 = vector.broadcast %cst_94 : f32 to vector<2x32xf32>
    %493 = arith.mulf %491, %492 : vector<2x32xf32>
    %c0_95 = arith.constant 0 : index
    %c0_96 = arith.constant 0 : index
    %494 = vector.load %arg4[%c0_95, %c0_96] : memref<96x8xf32, #tpu.memory_space<vmem>>, vector<32x8xf32>
    %cst_97 = arith.constant dense<0.000000e+00> : vector<2x8xf32>
    %495 = tpu.matmul %489, %494, %cst_97 {dimension_numbers = #tpu.dot_dimension_numbers<[1], [0], [0], [1], [0, 0, 1, 1], [], []>} : vector<2x32xf32>, vector<32x8xf32>, vector<2x8xf32> -> vector<2x8xf32>
    %c32 = arith.constant 32 : index
    %c0_98 = arith.constant 0 : index
    %496 = vector.load %arg4[%c32, %c0_98] : memref<96x8xf32, #tpu.memory_space<vmem>>, vector<32x8xf32>
    %cst_99 = arith.constant dense<0.000000e+00> : vector<2x8xf32>
    %497 = tpu.matmul %490, %496, %cst_99 {dimension_numbers = #tpu.dot_dimension_numbers<[1], [0], [0], [1], [0, 0, 1, 1], [], []>} : vector<2x32xf32>, vector<32x8xf32>, vector<2x8xf32> -> vector<2x8xf32>
    %498 = arith.addf %495, %497 : vector<2x8xf32>
    %c64 = arith.constant 64 : index
    %c0_100 = arith.constant 0 : index
    %499 = vector.load %arg4[%c64, %c0_100] : memref<96x8xf32, #tpu.memory_space<vmem>>, vector<32x8xf32>
    %cst_101 = arith.constant dense<0.000000e+00> : vector<2x8xf32>
    %500 = tpu.matmul %493, %499, %cst_101 {dimension_numbers = #tpu.dot_dimension_numbers<[1], [0], [0], [1], [0, 0, 1, 1], [], []>} : vector<2x32xf32>, vector<32x8xf32>, vector<2x8xf32> -> vector<2x8xf32>
    %501 = arith.addf %498, %500 : vector<2x8xf32>
    %c0_102 = arith.constant 0 : index
    %c0_103 = arith.constant 0 : index
    %502 = vector.load %arg5[%c0_102, %c0_103] : memref<1x8xf32, #tpu.memory_space<vmem>>, vector<1x8xf32>
    %503 = vector.broadcast %502 : vector<1x8xf32> to vector<2x8xf32>
    %504 = arith.addf %501, %503 : vector<2x8xf32>
    %c0_104 = arith.constant 0 : index
    %c0_105 = arith.constant 0 : index
    %505 = vector.load %arg6[%c0_104, %c0_105] : memref<2x8xf32, #tpu.memory_space<vmem>>, vector<2x8xf32>
    tpu.vector_store %arg6[%c0_104, %c0_105], %504 {strides = array<i32>} : memref<2x8xf32, #tpu.memory_space<vmem>>, vector<2x8xf32>,
    return
  }
}

</mosaic_0001>

<bundles_post_ra>
// kernel: tpu_custom_call.1
= control target key start
LH: loop header
LB: loop body
LE: loop exit
PB: predicated region body
PF: predicated region fallthrough
CT: control target
= control target key end

     0   :  { %vm49_vm0 = vcmask 1043456   ;;  %vm36_vm1 = vcmask 31744   ;;  %v2556_v4 = vmov 0.0   ;;  %s2974_s0 = inlined_call_operand.vmem [shape: f32[32,4], index: 0, kind: input, shape index: {}]   ;;  %s2975_s1 = inlined_call_operand.vmem [shape: f32[4,128], index: 1, kind: input, shape index: {}]   ;;  %s2976_s2 = inlined_call_operand.vmem [shape: f32[32,128], index: 2, kind: input, shape index: {}]   ;;  %s2977_s3 = inlined_call_operand.vmem [shape: f32[1,128], index: 3, kind: input, shape index: {}]   ;;  %s2978_s4 = inlined_call_operand.vmem [shape: f32[96,8], index: 4, kind: input, shape index: {}]   ;;  %s2979_s5 = inlined_call_operand.vmem [shape: f32[1,8], index: 5, kind: input, shape index: {}]   ;;  %s2980_s6 = inlined_call_operand.hbm [shape: f32[2,8], index: 6, kind: output, shape index: {}]  }
   0x1   :  { %v28_v0 = vld [vmem:[%s2975_s1] sm:$0xf]  ;;  %v25_v2 = vld [vmem:[%s2974_s0 + $0x8] sm:$0xff]  ;;  %v2609_v3 = vld [vmem:[%s2976_s2 + $0x18] sm:$0xff]  ;;  %2188 = vmatprep.subr.mxu1 %v2556_v4 }
   0x2   :  { %v24_v1 = vld [vmem:[%s2974_s0] sm:$0xff]  ;;  %2180 = vmatprep.subr.msk.mxu0 %vm49_vm0, %v28_v0  ;;  %v2615_v5 = vld [vmem:[%s2976_s2 + $0x10] sm:$0xff] }
   0x3   :  { %2182 = vmatprep.mubr.msk.f32.mxu0 %vm36_vm1, %v24_v1  ;;  %2181 = vmatpush3.msk.msra.mxu0 %vm49_vm0, %v28_v0 }
   0x4   :  { %11 = vsyncpa [#allocation4], 0  ;;  %2183 = vmatmul.mubr.msk.f32.vlgmr.msra.gmra.mxu0 %vm36_vm1, %v25_v2  ;;  %2189 = vmatpush3.msra.mxu1 %v2609_v3  ;;  %v2623_v6 = vld [vmem:[%s2976_s2 + $0x8] sm:$0xff]  ;;  %vm2557_vm2 = vmmov 0   ;;  %v2633_v7 = vld [vmem:[%s2976_s2] sm:$0xff]  ;;  %s2558_s12 = smov 64  }
   0x5   :  { %2190 = vmatprep.subr.mxu1 %v2556_v4  ;;  %2196 = vmatprep.mubr.msk.f32.mxu1 %vm2557_vm2, %v2556_v4  ;;  %v2039_v8 = vld [vmem:[%s2977_s3] ss:$0 sm:$0xff]  ;;  %s2559_s3 = smov 32   ;;  %v26_v27 = vld [vmem:[%s2974_s0 + $0x10] sm:$0xff]  ;;  %v27_v28 = vld [vmem:[%s2974_s0 + $0x18] sm:$0xff]  ;;  %vm147_vm3 = vcmask 261120  }
   0x6   :  { %2191 = vmatpush3.msra.mxu1 %v2615_v5  ;;  %2199 = vmatprep.subr.mxu0 %v2556_v4  ;;  %s2560_s22 = smov [#allocation3]   ;;  %vm2023_vm4 = vcmask 58368  }
   0x7   :  { %2192 = vmatprep.subr.mxu1 %v2556_v4  ;;  %2200 = vmatpush3.msra.mxu0 %v2609_v3  ;;  %s2031_s23 = sshll.u32 %s2560_s22, 4  ;;  %s2032_s23 = int_to_ptr.vmem [resolvable:$true] %s2031_s23 }
   0x8   :  { %2193 = vmatpush3.msra.mxu1 %v2623_v6  ;;  %2201 = vmatprep.subr.mxu0 %v2556_v4  ;;  %p2539_p1 = scmp.lt.s32.totalorder %s2032_s23, %s2032_s23 }
   0x9   :  { %2194 = vmatprep.subr.mxu1 %v2556_v4  ;;  %2202 = vmatpush3.msra.mxu0 %v2615_v5 }
   0xa   :  { %2195 = vmatpush3.msra.mxu1 %v2633_v7  ;;  %2203 = vmatprep.subr.mxu0 %v2556_v4 }
   0xb   :  { %2197 = vmatmul.mubr.f32.vlgmr.msra.gmra.mxu1 %v2556_v4  ;;  %2204 = vmatpush3.msra.mxu0 %v2623_v6 }
   0xc   :  { %2205 = vmatprep.subr.mxu0 %v2556_v4  ;;  %2210 = vmatprep.subr.mxu1 %v2556_v4 }
   0xd   :  { %2206 = vmatpush3.msra.mxu0 %v2633_v7  ;;  %2211 = vmatpush3.msra.mxu1 %v2609_v3 }
   0xe   :  { %2212 = vmatprep.subr.mxu1 %v2556_v4  ;;  %2218 = vmatprep.mubr.msk.f32.mxu1 %vm2557_vm2, %v2556_v4 }
   0xf   :  { %2213 = vmatpush3.msra.mxu1 %v2615_v5  ;;  %2221 = vmatprep.subr.mxu0 %v2556_v4 }
  0x10   :  { %2214 = vmatprep.subr.mxu1 %v2556_v4  ;;  %2185 = vmatprep.mubr.msk.f32.mxu0 %vm36_vm1, %v26_v27 }
  0x11   :  { %2215 = vmatpush3.msra.mxu1 %v2623_v6  ;;  %2186 = vmatmul.mubr.msk.f32.gmra.mxu0 %vm36_vm1, %v27_v28 }
  0x12   :  { %2216 = vmatprep.subr.mxu1 %v2556_v4  ;;  %2207 = vmatprep.mubr.msk.f32.mxu0 %vm2557_vm2, %v2556_v4 }
  0x13   :  { %2217 = vmatpush3.msra.mxu1 %v2633_v7 }
  0x14   :  { %2232 = vmatprep.subr.mxu1 %v2556_v4 }
  0xc4   :  { %v2184_v9 = vpop.f32.mrf.mxu0 }
  0xc5   :  { %v125_v10 = vadd.f32 %v2184_v9, %v2039_v8 }
  0xc6   :  { %v119_v11 = vpop.f32.mrf.mxu0 }
  0xc7   :  { %139 = vst [vmem:[#allocation2 + $0x8] sm:$0xff] %v125_v10  ;;  %v120_v12 = vadd.f32 %v2039_v8, %v119_v11 }
  0xc9   :  { %138 = vst [vmem:[#allocation2] sm:$0xff] %v120_v12 }
  0xcb   :  { %v217_v13 = vpop.f32.mrf.mxu1 }
  0xcd   :  { %v2198_v14 = vpop.f32.mrf.mxu1 }
  0xd0   :  { %v146_v15 = vld [vmem:[#allocation2] sm:$0x3]  ;;  %v246_v37 = vld [vmem:[#allocation2 + $0x2] sm:$0x3]  ;;  %v348_v55 = vld [vmem:[#allocation2 + $0x4] sm:$0x3] }
  0xd1   :  { %v218_v16 = vadd.f32 %v217_v13, %v146_v15  ;;  %v2187_v32 = vpop.f32.mrf.mxu0 }
  0xd2   :  { %v135_v33 = vadd.f32 %v2187_v32, %v2039_v8 }
  0xd3   :  { %2402 = vtanh.f32 %v218_v16  ;;  %v2045_v18 = vmul.f32 -1.442695, %v218_v16  ;;  %v129_v34 = vpop.f32.mrf.mxu0 }
  0xd4   :  { %141 = vst [vmem:[#allocation2 + $0x18] sm:$0xff] %v135_v33  ;;  %v130_v35 = vadd.f32 %v2039_v8, %v129_v34 }
  0xd5   :  { %2404 = vpow2.f32 %v2045_v18  ;;  %v450_v18 = vld [vmem:[#allocation2 + $0x6] sm:$0x3] }
  0xd6   :  { %140 = vst [vmem:[#allocation2 + $0x10] sm:$0xff] %v130_v35 }
  0xe0   :  { %v2403_v17 = vpop.eup %2402 }
  0xe1   :  { %230 = vrot.lane.b32.xlu0 %v2403_v17, %s2558_s12 }
  0xe2   :  { %v2405_v19 = vpop.eup %2404 }
  0xe3   :  { %v224_v20 = vadd.f32 1.0, %v2405_v19 }
  0xe5   :  { %2406 = vrcp.f32 %v224_v20 }
  0xf2   :  { %v2407_v21 = vpop.eup %2406 }
  0xf3   :  { %v228_v24 = vmul.f32 0.0, %v2407_v21 }
 0x153   :  { %v231_v22 = vpop.permute.xlu0 %230 }
 0x154   :  { %v233_v23 = vmul.f32 %v2407_v21, %v231_v22 }
 0x156   :  { %235 = vrot.lane.b32.xlu0 %v233_v23, %s2559_s3 }
 0x1c8   :  { %v236_v25 = vpop.permute.xlu0 %235 }
 0x1c9   :  { %v238_v26 = vadd.f32 %v236_v25, %v228_v24 }
 0x1cb   :  { %2408 = vtanh.f32 %v238_v26 }
 0x1d8   :  { %v2409_v29 = vpop.eup %2408 }
 0x1d9   :  { %241 = vrot.lane.b32.xlu1 %v2409_v29, %s2558_s12 }
 0x24b   :  { %v242_v30 = vpop.permute.xlu1 %241 }
 0x24c   :  { %v2674_v31 = vmul.f32 %v2407_v21, %v242_v30 }
 0x24e   :  { %248 = vrot.lane.b32.xlu1 %v2674_v31, %s2559_s3 }
 0x2c0   :  { %v249_v36 = vpop.permute.xlu1 %248 }
 0x2c1   :  { %2208 = vmatmul.mubr.msk.f32.vlgmr.msra.gmra.mxu0 %vm147_vm3, %v249_v36 }
 0x2c2   :  { %2222 = vmatpush3.msra.mxu0 %v2609_v3  ;;  %2229 = vmatprep.mubr.msk.f32.mxu0 %vm2557_vm2, %v2556_v4 }
 0x2c3   :  { %2223 = vmatprep.subr.mxu0 %v2556_v4 }
 0x2c4   :  { %2224 = vmatpush3.msra.mxu0 %v2615_v5 }
 0x2c5   :  { %2225 = vmatprep.subr.mxu0 %v2556_v4 }
 0x2c6   :  { %2226 = vmatpush3.msra.mxu0 %v2623_v6 }
 0x2c7   :  { %2227 = vmatprep.subr.mxu0 %v2556_v4 }
 0x2c8   :  { %2228 = vmatpush3.msra.mxu0 %v2633_v7 }
 0x2c9   :  { %2243 = vmatprep.subr.mxu0 %v2556_v4 }
 0x381   :  { %v318_v38 = vpop.f32.mrf.mxu0 }
 0x382   :  { %v319_v39 = vadd.f32 %v318_v38, %v246_v37  ;;  %v552_v38 = vld [vmem:[#allocation2 + $0x8] sm:$0x3] }
 0x383   :  { %v2209_v40 = vpop.f32.mrf.mxu0 }
 0x384   :  { %2410 = vtanh.f32 %v319_v39  ;;  %v2047_v42 = vmul.f32 -1.442695, %v319_v39 }
 0x386   :  { %2412 = vpow2.f32 %v2047_v42 }
 0x391   :  { %v2411_v41 = vpop.eup %2410 }
 0x392   :  { %331 = vrot.lane.b32.xlu0 %v2411_v41, %s2558_s12 }
 0x393   :  { %v2413_v43 = vpop.eup %2412 }
 0x394   :  { %v325_v44 = vadd.f32 1.0, %v2413_v43 }
 0x396   :  { %2414 = vrcp.f32 %v325_v44 }
 0x3a3   :  { %v2415_v45 = vpop.eup %2414 }
 0x3a4   :  { %v329_v48 = vmul.f32 %v2415_v45, %v238_v26 }
 0x404   :  { %v332_v46 = vpop.permute.xlu0 %331 }
 0x405   :  { %v334_v47 = vmul.f32 %v2415_v45, %v332_v46 }
 0x407   :  { %336 = vrot.lane.b32.xlu1 %v334_v47, %s2559_s3 }
 0x479   :  { %v337_v49 = vpop.permute.xlu1 %336 }
 0x47a   :  { %v339_v50 = vadd.f32 %v337_v49, %v329_v48 }
 0x47c   :  { %2416 = vtanh.f32 %v339_v50 }
 0x489   :  { %v2417_v51 = vpop.eup %2416 }
 0x48a   :  { %342 = vrot.lane.b32.xlu0 %v2417_v51, %s2558_s12 }
 0x4fc   :  { %v343_v52 = vpop.permute.xlu0 %342 }
 0x4fd   :  { %v345_v53 = vmul.f32 %v2415_v45, %v343_v52 }
 0x4ff   :  { %350 = vrot.lane.b32.xlu1 %v345_v53, %s2559_s3  ;;  %v346_v12 = vmax.f32 %v2674_v31, %v345_v53  ;;  %v347_v13 = vadd.f32 %v345_v53, %v2674_v31 }
 0x571   :  { %v351_v54 = vpop.permute.xlu1 %350 }
 0x572   :  { %2219 = vmatmul.mubr.msk.f32.vlgmr.msra.gmra.mxu1 %vm147_vm3, %v351_v54 }
 0x573   :  { %2233 = vmatpush3.msra.mxu1 %v2609_v3  ;;  %2240 = vmatprep.mubr.msk.f32.mxu1 %vm2557_vm2, %v2556_v4 }
 0x574   :  { %2234 = vmatprep.subr.mxu1 %v2556_v4 }
 0x575   :  { %2235 = vmatpush3.msra.mxu1 %v2615_v5 }
 0x576   :  { %2236 = vmatprep.subr.mxu1 %v2556_v4 }
 0x577   :  { %2237 = vmatpush3.msra.mxu1 %v2623_v6 }
 0x578   :  { %2238 = vmatprep.subr.mxu1 %v2556_v4 }
 0x579   :  { %2239 = vmatpush3.msra.mxu1 %v2633_v7 }
 0x57a   :  { %2254 = vmatprep.subr.mxu1 %v2556_v4 }
 0x632   :  { %v420_v56 = vpop.f32.mrf.mxu1 }
 0x633   :  { %v421_v57 = vadd.f32 %v420_v56, %v348_v55 }
 0x634   :  { %v2220_v58 = vpop.f32.mrf.mxu1 }
 0x635   :  { %2418 = vtanh.f32 %v421_v57  ;;  %v2049_v60 = vmul.f32 -1.442695, %v421_v57  ;;  %v654_v58 = vld [vmem:[#allocation2 + $0xa] sm:$0x3] }
 0x637   :  { %2420 = vpow2.f32 %v2049_v60 }
 0x642   :  { %v2419_v59 = vpop.eup %2418 }
 0x643   :  { %433 = vrot.lane.b32.xlu0 %v2419_v59, %s2558_s12 }
 0x644   :  { %v2421_v61 = vpop.eup %2420 }
 0x645   :  { %v427_v62 = vadd.f32 1.0, %v2421_v61 }
 0x647   :  { %2422 = vrcp.f32 %v427_v62 }
 0x654   :  { %v2423_v63 = vpop.eup %2422 }
 0x655   :  { %v431_v2 = vmul.f32 %v2423_v63, %v339_v50 }
 0x6b5   :  { %v434_v0 = vpop.permute.xlu0 %433 }
 0x6b6   :  { %v436_v1 = vmul.f32 %v2423_v63, %v434_v0 }
 0x6b8   :  { %438 = vrot.lane.b32.xlu1 %v436_v1, %s2559_s3 }
 0x72a   :  { %v439_v8 = vpop.permute.xlu1 %438 }
 0x72b   :  { %v441_v9 = vadd.f32 %v439_v8, %v431_v2 }
 0x72d   :  { %2424 = vtanh.f32 %v441_v9 }
 0x73a   :  { %v2425_v10 = vpop.eup %2424 }
 0x73b   :  { %444 = vrot.lane.b32.xlu0 %v2425_v10, %s2558_s12 }
 0x7ad   :  { %v445_v11 = vpop.permute.xlu0 %444 }
 0x7ae   :  { %v447_v14 = vmul.f32 %v2423_v63, %v445_v11 }
 0x7b0   :  { %v2709_v15 = vmax.f32 %v346_v12, %v447_v14  ;;  %v449_v16 = vadd.f32 %v447_v14, %v347_v13  ;;  %452 = vrot.lane.b32.xlu1 %v447_v14, %s2559_s3 }
 0x822   :  { %v453_v17 = vpop.permute.xlu1 %452 }
 0x823   :  { %2230 = vmatmul.mubr.msk.f32.vlgmr.msra.gmra.mxu0 %vm147_vm3, %v453_v17 }
 0x824   :  { %2244 = vmatpush3.msra.mxu0 %v2609_v3  ;;  %2251 = vmatprep.mubr.msk.f32.mxu0 %vm2557_vm2, %v2556_v4 }
 0x825   :  { %2245 = vmatprep.subr.mxu0 %v2556_v4 }
 0x826   :  { %2246 = vmatpush3.msra.mxu0 %v2615_v5 }
 0x827   :  { %2247 = vmatprep.subr.mxu0 %v2556_v4 }
 0x828   :  { %2248 = vmatpush3.msra.mxu0 %v2623_v6 }
 0x829   :  { %2249 = vmatprep.subr.mxu0 %v2556_v4 }
 0x82a   :  { %2250 = vmatpush3.msra.mxu0 %v2633_v7 }
 0x82b   :  { %2265 = vmatprep.subr.mxu0 %v2556_v4 }
 0x8e3   :  { %v522_v19 = vpop.f32.mrf.mxu0 }
 0x8e4   :  { %v523_v20 = vadd.f32 %v522_v19, %v450_v18  ;;  %v756_v19 = vld [vmem:[#allocation2 + $0xc] sm:$0x3] }
 0x8e5   :  { %v2231_v21 = vpop.f32.mrf.mxu0 }
 0x8e6   :  { %2426 = vtanh.f32 %v523_v20  ;;  %v2051_v23 = vmul.f32 -1.442695, %v523_v20 }
 0x8e8   :  { %2428 = vpow2.f32 %v2051_v23 }
 0x8f3   :  { %v2427_v22 = vpop.eup %2426 }
 0x8f4   :  { %535 = vrot.lane.b32.xlu0 %v2427_v22, %s2558_s12 }
 0x8f5   :  { %v2429_v24 = vpop.eup %2428 }
 0x8f6   :  { %v529_v25 = vadd.f32 1.0, %v2429_v24 }
 0x8f8   :  { %2430 = vrcp.f32 %v529_v25 }
 0x905   :  { %v2431_v26 = vpop.eup %2430 }
 0x906   :  { %v533_v29 = vmul.f32 %v2431_v26, %v441_v9 }
 0x966   :  { %v536_v27 = vpop.permute.xlu0 %535 }
 0x967   :  { %v538_v28 = vmul.f32 %v2431_v26, %v536_v27 }
 0x969   :  { %540 = vrot.lane.b32.xlu1 %v538_v28, %s2559_s3 }
 0x9db   :  { %v541_v30 = vpop.permute.xlu1 %540 }
 0x9dc   :  { %v543_v31 = vadd.f32 %v541_v30, %v533_v29 }
 0x9de   :  { %2432 = vtanh.f32 %v543_v31 }
 0x9eb   :  { %v2433_v32 = vpop.eup %2432 }
 0x9ec   :  { %546 = vrot.lane.b32.xlu0 %v2433_v32, %s2558_s12 }
 0xa5e   :  { %v547_v33 = vpop.permute.xlu0 %546 }
 0xa5f   :  { %v549_v34 = vmul.f32 %v2431_v26, %v547_v33 }
 0xa61   :  { %v550_v35 = vmax.f32 %v2709_v15, %v549_v34  ;;  %v551_v36 = vadd.f32 %v549_v34, %v449_v16  ;;  %554 = vrot.lane.b32.xlu1 %v549_v34, %s2559_s3 }
 0xad3   :  { %v555_v37 = vpop.permute.xlu1 %554 }
 0xad4   :  { %2241 = vmatmul.mubr.msk.f32.vlgmr.msra.gmra.mxu1 %vm147_vm3, %v555_v37 }
 0xad5   :  { %2255 = vmatpush3.msra.mxu1 %v2609_v3  ;;  %2262 = vmatprep.mubr.msk.f32.mxu1 %vm2557_vm2, %v2556_v4 }
 0xad6   :  { %2256 = vmatprep.subr.mxu1 %v2556_v4 }
 0xad7   :  { %2257 = vmatpush3.msra.mxu1 %v2615_v5 }
 0xad8   :  { %2258 = vmatprep.subr.mxu1 %v2556_v4 }
 0xad9   :  { %2259 = vmatpush3.msra.mxu1 %v2623_v6 }
 0xada   :  { %2260 = vmatprep.subr.mxu1 %v2556_v4 }
 0xadb   :  { %2261 = vmatpush3.msra.mxu1 %v2633_v7 }
 0xadc   :  { %2276 = vmatprep.subr.mxu1 %v2556_v4 }
 0xb94   :  { %v624_v39 = vpop.f32.mrf.mxu1 }
 0xb95   :  { %v625_v40 = vadd.f32 %v624_v39, %v552_v38  ;;  %v858_v39 = vld [vmem:[#allocation2 + $0xe] sm:$0x3] }
 0xb96   :  { %v2242_v41 = vpop.f32.mrf.mxu1 }
 0xb97   :  { %2434 = vtanh.f32 %v625_v40  ;;  %v2053_v43 = vmul.f32 -1.442695, %v625_v40 }
 0xb99   :  { %2436 = vpow2.f32 %v2053_v43 }
 0xba4   :  { %v2435_v42 = vpop.eup %2434 }
 0xba5   :  { %637 = vrot.lane.b32.xlu0 %v2435_v42, %s2558_s12 }
 0xba6   :  { %v2437_v44 = vpop.eup %2436 }
 0xba7   :  { %v631_v45 = vadd.f32 1.0, %v2437_v44 }
 0xba9   :  { %2438 = vrcp.f32 %v631_v45 }
 0xbb6   :  { %v2439_v46 = vpop.eup %2438 }
 0xbb7   :  { %v635_v49 = vmul.f32 %v2439_v46, %v543_v31 }
 0xc17   :  { %v638_v47 = vpop.permute.xlu0 %637 }
 0xc18   :  { %v640_v48 = vmul.f32 %v2439_v46, %v638_v47 }
 0xc1a   :  { %642 = vrot.lane.b32.xlu1 %v640_v48, %s2559_s3 }
 0xc8c   :  { %v643_v50 = vpop.permute.xlu1 %642 }
 0xc8d   :  { %v645_v51 = vadd.f32 %v643_v50, %v635_v49 }
 0xc8f   :  { %2440 = vtanh.f32 %v645_v51 }
 0xc9c   :  { %v2441_v52 = vpop.eup %2440 }
 0xc9d   :  { %648 = vrot.lane.b32.xlu0 %v2441_v52, %s2558_s12 }
 0xd0f   :  { %v649_v53 = vpop.permute.xlu0 %648 }
 0xd10   :  { %v651_v54 = vmul.f32 %v2439_v46, %v649_v53 }
 0xd12   :  { %v2742_v55 = vmax.f32 %v550_v35, %v651_v54  ;;  %v653_v56 = vadd.f32 %v651_v54, %v551_v36  ;;  %656 = vrot.lane.b32.xlu1 %v651_v54, %s2559_s3 }
 0xd84   :  { %v657_v57 = vpop.permute.xlu1 %656 }
 0xd85   :  { %2252 = vmatmul.mubr.msk.f32.vlgmr.msra.gmra.mxu0 %vm147_vm3, %v657_v57 }
 0xd86   :  { %2266 = vmatpush3.msra.mxu0 %v2609_v3  ;;  %2273 = vmatprep.mubr.msk.f32.mxu0 %vm2557_vm2, %v2556_v4 }
 0xd87   :  { %2267 = vmatprep.subr.mxu0 %v2556_v4 }
 0xd88   :  { %2268 = vmatpush3.msra.mxu0 %v2615_v5 }
 0xd89   :  { %2269 = vmatprep.subr.mxu0 %v2556_v4 }
 0xd8a   :  { %2270 = vmatpush3.msra.mxu0 %v2623_v6 }
 0xd8b   :  { %2271 = vmatprep.subr.mxu0 %v2556_v4 }
 0xd8c   :  { %2272 = vmatpush3.msra.mxu0 %v2633_v7 }
 0xd8d   :  { %2287 = vmatprep.subr.mxu0 %v2556_v4 }
 0xe45   :  { %v726_v59 = vpop.f32.mrf.mxu0 }
 0xe46   :  { %v727_v60 = vadd.f32 %v726_v59, %v654_v58  ;;  %v960_v59 = vld [vmem:[#allocation2 + $0x10] sm:$0x3] }
 0xe47   :  { %v2253_v61 = vpop.f32.mrf.mxu0 }
 0xe48   :  { %2442 = vtanh.f32 %v727_v60  ;;  %v2055_v63 = vmul.f32 -1.442695, %v727_v60 }
 0xe4a   :  { %2444 = vpow2.f32 %v2055_v63 }
 0xe55   :  { %v2443_v62 = vpop.eup %2442 }
 0xe56   :  { %739 = vrot.lane.b32.xlu0 %v2443_v62, %s2558_s12 }
 0xe57   :  { %v2445_v0 = vpop.eup %2444 }
 0xe58   :  { %v733_v1 = vadd.f32 1.0, %v2445_v0 }
 0xe5a   :  { %2446 = vrcp.f32 %v733_v1 }
 0xe67   :  { %v2447_v2 = vpop.eup %2446 }
 0xe68   :  { %v737_v10 = vmul.f32 %v2447_v2, %v645_v51 }
 0xec8   :  { %v740_v8 = vpop.permute.xlu0 %739 }
 0xec9   :  { %v742_v9 = vmul.f32 %v2447_v2, %v740_v8 }
 0xecb   :  { %744 = vrot.lane.b32.xlu1 %v742_v9, %s2559_s3 }
 0xf3d   :  { %v745_v11 = vpop.permute.xlu1 %744 }
 0xf3e   :  { %v747_v12 = vadd.f32 %v745_v11, %v737_v10 }
 0xf40   :  { %2448 = vtanh.f32 %v747_v12 }
 0xf4d   :  { %v2449_v13 = vpop.eup %2448 }
 0xf4e   :  { %750 = vrot.lane.b32.xlu0 %v2449_v13, %s2558_s12 }
 0xfc0   :  { %v751_v14 = vpop.permute.xlu0 %750 }
 0xfc1   :  { %v753_v15 = vmul.f32 %v2447_v2, %v751_v14 }
 0xfc3   :  { %v754_v16 = vmax.f32 %v2742_v55, %v753_v15  ;;  %v755_v17 = vadd.f32 %v753_v15, %v653_v56  ;;  %758 = vrot.lane.b32.xlu1 %v753_v15, %s2559_s3 }
0x1035   :  { %v759_v18 = vpop.permute.xlu1 %758 }
0x1036   :  { %2263 = vmatmul.mubr.msk.f32.vlgmr.msra.gmra.mxu1 %vm147_vm3, %v759_v18 }
0x1037   :  { %2277 = vmatpush3.msra.mxu1 %v2609_v3  ;;  %2284 = vmatprep.mubr.msk.f32.mxu1 %vm2557_vm2, %v2556_v4 }
0x1038   :  { %2278 = vmatprep.subr.mxu1 %v2556_v4 }
0x1039   :  { %2279 = vmatpush3.msra.mxu1 %v2615_v5 }
0x103a   :  { %2280 = vmatprep.subr.mxu1 %v2556_v4 }
0x103b   :  { %2281 = vmatpush3.msra.mxu1 %v2623_v6 }
0x103c   :  { %2282 = vmatprep.subr.mxu1 %v2556_v4 }
0x103d   :  { %2283 = vmatpush3.msra.mxu1 %v2633_v7 }
0x103e   :  { %2298 = vmatprep.subr.mxu1 %v2556_v4 }
0x10f6   :  { %v828_v20 = vpop.f32.mrf.mxu1 }
0x10f7   :  { %v829_v21 = vadd.f32 %v828_v20, %v756_v19  ;;  %v1062_v20 = vld [vmem:[#allocation2 + $0x12] sm:$0x3] }
0x10f8   :  { %v2264_v22 = vpop.f32.mrf.mxu1 }
0x10f9   :  { %2450 = vtanh.f32 %v829_v21  ;;  %v2057_v24 = vmul.f32 -1.442695, %v829_v21 }
0x10fb   :  { %2452 = vpow2.f32 %v2057_v24 }
0x1106   :  { %v2451_v23 = vpop.eup %2450 }
0x1107   :  { %841 = vrot.lane.b32.xlu0 %v2451_v23, %s2558_s12 }
0x1108   :  { %v2453_v25 = vpop.eup %2452 }
0x1109   :  { %v835_v26 = vadd.f32 1.0, %v2453_v25 }
0x110b   :  { %2454 = vrcp.f32 %v835_v26 }
0x1118   :  { %v2455_v27 = vpop.eup %2454 }
0x1119   :  { %v839_v30 = vmul.f32 %v2455_v27, %v747_v12 }
0x1179   :  { %v842_v28 = vpop.permute.xlu0 %841 }
0x117a   :  { %v844_v29 = vmul.f32 %v2455_v27, %v842_v28 }
0x117c   :  { %846 = vrot.lane.b32.xlu1 %v844_v29, %s2559_s3 }
0x11ee   :  { %v847_v31 = vpop.permute.xlu1 %846 }
0x11ef   :  { %v849_v32 = vadd.f32 %v847_v31, %v839_v30 }
0x11f1   :  { %2456 = vtanh.f32 %v849_v32 }
0x11fe   :  { %v2457_v33 = vpop.eup %2456 }
0x11ff   :  { %852 = vrot.lane.b32.xlu0 %v2457_v33, %s2558_s12 }
0x1271   :  { %v853_v34 = vpop.permute.xlu0 %852 }
0x1272   :  { %v855_v35 = vmul.f32 %v2455_v27, %v853_v34 }
0x1274   :  { %v2775_v36 = vmax.f32 %v754_v16, %v855_v35  ;;  %v857_v37 = vadd.f32 %v855_v35, %v755_v17  ;;  %860 = vrot.lane.b32.xlu1 %v855_v35, %s2559_s3 }
0x12e6   :  { %v861_v38 = vpop.permute.xlu1 %860 }
0x12e7   :  { %2274 = vmatmul.mubr.msk.f32.vlgmr.msra.gmra.mxu0 %vm147_vm3, %v861_v38 }
0x12e8   :  { %2288 = vmatpush3.msra.mxu0 %v2609_v3  ;;  %2295 = vmatprep.mubr.msk.f32.mxu0 %vm2557_vm2, %v2556_v4 }
0x12e9   :  { %2289 = vmatprep.subr.mxu0 %v2556_v4 }
0x12ea   :  { %2290 = vmatpush3.msra.mxu0 %v2615_v5 }
0x12eb   :  { %2291 = vmatprep.subr.mxu0 %v2556_v4 }
0x12ec   :  { %2292 = vmatpush3.msra.mxu0 %v2623_v6 }
0x12ed   :  { %2293 = vmatprep.subr.mxu0 %v2556_v4 }
0x12ee   :  { %2294 = vmatpush3.msra.mxu0 %v2633_v7 }
0x12ef   :  { %2309 = vmatprep.subr.mxu0 %v2556_v4 }
0x13a7   :  { %v930_v40 = vpop.f32.mrf.mxu0 }
0x13a8   :  { %v931_v41 = vadd.f32 %v930_v40, %v858_v39  ;;  %v1164_v40 = vld [vmem:[#allocation2 + $0x14] sm:$0x3] }
0x13a9   :  { %v2275_v42 = vpop.f32.mrf.mxu0 }
0x13aa   :  { %2458 = vtanh.f32 %v931_v41  ;;  %v2059_v44 = vmul.f32 -1.442695, %v931_v41 }
0x13ac   :  { %2460 = vpow2.f32 %v2059_v44 }
0x13b7   :  { %v2459_v43 = vpop.eup %2458 }
0x13b8   :  { %943 = vrot.lane.b32.xlu0 %v2459_v43, %s2558_s12 }
0x13b9   :  { %v2461_v45 = vpop.eup %2460 }
0x13ba   :  { %v937_v46 = vadd.f32 1.0, %v2461_v45 }
0x13bc   :  { %2462 = vrcp.f32 %v937_v46 }
0x13c9   :  { %v2463_v47 = vpop.eup %2462 }
0x13ca   :  { %v941_v50 = vmul.f32 %v2463_v47, %v849_v32 }
0x142a   :  { %v944_v48 = vpop.permute.xlu0 %943 }
0x142b   :  { %v946_v49 = vmul.f32 %v2463_v47, %v944_v48 }
0x142d   :  { %948 = vrot.lane.b32.xlu1 %v946_v49, %s2559_s3 }
0x149f   :  { %v949_v51 = vpop.permute.xlu1 %948 }
0x14a0   :  { %v951_v52 = vadd.f32 %v949_v51, %v941_v50 }
0x14a2   :  { %2464 = vtanh.f32 %v951_v52 }
0x14af   :  { %v2465_v53 = vpop.eup %2464 }
0x14b0   :  { %954 = vrot.lane.b32.xlu0 %v2465_v53, %s2558_s12 }
0x1522   :  { %v955_v54 = vpop.permute.xlu0 %954 }
0x1523   :  { %v957_v55 = vmul.f32 %v2463_v47, %v955_v54 }
0x1525   :  { %v958_v56 = vmax.f32 %v2775_v36, %v957_v55  ;;  %v959_v57 = vadd.f32 %v957_v55, %v857_v37  ;;  %962 = vrot.lane.b32.xlu1 %v957_v55, %s2559_s3 }
0x1597   :  { %v963_v58 = vpop.permute.xlu1 %962 }
0x1598   :  { %2285 = vmatmul.mubr.msk.f32.vlgmr.msra.gmra.mxu1 %vm147_vm3, %v963_v58 }
0x1599   :  { %2299 = vmatpush3.msra.mxu1 %v2609_v3  ;;  %2306 = vmatprep.mubr.msk.f32.mxu1 %vm2557_vm2, %v2556_v4 }
0x159a   :  { %2300 = vmatprep.subr.mxu1 %v2556_v4 }
0x159b   :  { %2301 = vmatpush3.msra.mxu1 %v2615_v5 }
0x159c   :  { %2302 = vmatprep.subr.mxu1 %v2556_v4 }
0x159d   :  { %2303 = vmatpush3.msra.mxu1 %v2623_v6 }
0x159e   :  { %2304 = vmatprep.subr.mxu1 %v2556_v4 }
0x159f   :  { %2305 = vmatpush3.msra.mxu1 %v2633_v7 }
0x15a0   :  { %2320 = vmatprep.subr.mxu1 %v2556_v4 }
0x1658   :  { %v1032_v60 = vpop.f32.mrf.mxu1 }
0x1659   :  { %v1033_v61 = vadd.f32 %v1032_v60, %v960_v59  ;;  %v1266_v60 = vld [vmem:[#allocation2 + $0x16] sm:$0x3] }
0x165a   :  { %v2286_v62 = vpop.f32.mrf.mxu1 }
0x165b   :  { %2466 = vtanh.f32 %v1033_v61  ;;  %v2061_v0 = vmul.f32 -1.442695, %v1033_v61 }
0x165d   :  { %2468 = vpow2.f32 %v2061_v0 }
0x1668   :  { %v2467_v63 = vpop.eup %2466 }
0x1669   :  { %1045 = vrot.lane.b32.xlu0 %v2467_v63, %s2558_s12 }
0x166a   :  { %v2469_v1 = vpop.eup %2468 }
0x166b   :  { %v1039_v2 = vadd.f32 1.0, %v2469_v1 }
0x166d   :  { %2470 = vrcp.f32 %v1039_v2 }
0x167a   :  { %v2471_v8 = vpop.eup %2470 }
0x167b   :  { %v1043_v11 = vmul.f32 %v2471_v8, %v951_v52 }
0x16db   :  { %v1046_v9 = vpop.permute.xlu0 %1045 }
0x16dc   :  { %v1048_v10 = vmul.f32 %v2471_v8, %v1046_v9 }
0x16de   :  { %1050 = vrot.lane.b32.xlu1 %v1048_v10, %s2559_s3 }
0x1750   :  { %v1051_v12 = vpop.permute.xlu1 %1050 }
0x1751   :  { %v1053_v13 = vadd.f32 %v1051_v12, %v1043_v11 }
0x1753   :  { %2472 = vtanh.f32 %v1053_v13 }
0x1760   :  { %v2473_v14 = vpop.eup %2472 }
0x1761   :  { %1056 = vrot.lane.b32.xlu0 %v2473_v14, %s2558_s12 }
0x17d3   :  { %v1057_v15 = vpop.permute.xlu0 %1056 }
0x17d4   :  { %v1059_v16 = vmul.f32 %v2471_v8, %v1057_v15 }
0x17d6   :  { %v2808_v17 = vmax.f32 %v958_v56, %v1059_v16  ;;  %v1061_v18 = vadd.f32 %v1059_v16, %v959_v57  ;;  %1064 = vrot.lane.b32.xlu1 %v1059_v16, %s2559_s3 }
0x1848   :  { %v1065_v19 = vpop.permute.xlu1 %1064 }
0x1849   :  { %2296 = vmatmul.mubr.msk.f32.vlgmr.msra.gmra.mxu0 %vm147_vm3, %v1065_v19 }
0x184a   :  { %2310 = vmatpush3.msra.mxu0 %v2609_v3  ;;  %2317 = vmatprep.mubr.msk.f32.mxu0 %vm2557_vm2, %v2556_v4 }
0x184b   :  { %2311 = vmatprep.subr.mxu0 %v2556_v4 }
0x184c   :  { %2312 = vmatpush3.msra.mxu0 %v2615_v5 }
0x184d   :  { %2313 = vmatprep.subr.mxu0 %v2556_v4 }
0x184e   :  { %2314 = vmatpush3.msra.mxu0 %v2623_v6 }
0x184f   :  { %2315 = vmatprep.subr.mxu0 %v2556_v4 }
0x1850   :  { %2316 = vmatpush3.msra.mxu0 %v2633_v7 }
0x1851   :  { %2331 = vmatprep.subr.mxu0 %v2556_v4 }
0x1909   :  { %v1134_v21 = vpop.f32.mrf.mxu0 }
0x190a   :  { %v1135_v22 = vadd.f32 %v1134_v21, %v1062_v20  ;;  %v1368_v21 = vld [vmem:[#allocation2 + $0x18] sm:$0x3] }
0x190b   :  { %v2297_v23 = vpop.f32.mrf.mxu0 }
0x190c   :  { %2474 = vtanh.f32 %v1135_v22  ;;  %v2063_v25 = vmul.f32 -1.442695, %v1135_v22 }
0x190e   :  { %2476 = vpow2.f32 %v2063_v25 }
0x1919   :  { %v2475_v24 = vpop.eup %2474 }
0x191a   :  { %1147 = vrot.lane.b32.xlu0 %v2475_v24, %s2558_s12 }
0x191b   :  { %v2477_v26 = vpop.eup %2476 }
0x191c   :  { %v1141_v27 = vadd.f32 1.0, %v2477_v26 }
0x191e   :  { %2478 = vrcp.f32 %v1141_v27 }
0x192b   :  { %v2479_v28 = vpop.eup %2478 }
0x192c   :  { %v1145_v31 = vmul.f32 %v2479_v28, %v1053_v13 }
0x198c   :  { %v1148_v29 = vpop.permute.xlu0 %1147 }
0x198d   :  { %v1150_v30 = vmul.f32 %v2479_v28, %v1148_v29 }
0x198f   :  { %1152 = vrot.lane.b32.xlu1 %v1150_v30, %s2559_s3 }
0x1a01   :  { %v1153_v32 = vpop.permute.xlu1 %1152 }
0x1a02   :  { %v1155_v33 = vadd.f32 %v1153_v32, %v1145_v31 }
0x1a04   :  { %2480 = vtanh.f32 %v1155_v33 }
0x1a11   :  { %v2481_v34 = vpop.eup %2480 }
0x1a12   :  { %1158 = vrot.lane.b32.xlu0 %v2481_v34, %s2558_s12 }
0x1a84   :  { %v1159_v35 = vpop.permute.xlu0 %1158 }
0x1a85   :  { %v1161_v36 = vmul.f32 %v2479_v28, %v1159_v35 }
0x1a87   :  { %v1162_v37 = vmax.f32 %v2808_v17, %v1161_v36  ;;  %v1163_v38 = vadd.f32 %v1161_v36, %v1061_v18  ;;  %1166 = vrot.lane.b32.xlu1 %v1161_v36, %s2559_s3 }
0x1af9   :  { %v1167_v39 = vpop.permute.xlu1 %1166 }
0x1afa   :  { %2307 = vmatmul.mubr.msk.f32.vlgmr.msra.gmra.mxu1 %vm147_vm3, %v1167_v39  ;;  %v2532_v39 = vld [vmem:[%s2976_s2 + $0x8] sm:$0xff] }
0x1afb   :  { %2321 = vmatpush3.msra.mxu1 %v2609_v3  ;;  %2328 = vmatprep.mubr.msk.f32.mxu1 %vm2557_vm2, %v2556_v4 }
0x1afc   :  { %2322 = vmatprep.subr.mxu1 %v2556_v4 }
0x1afd   :  { %2323 = vmatpush3.msra.mxu1 %v2615_v5 }
0x1afe   :  { %2324 = vmatprep.subr.mxu1 %v2556_v4 }
0x1aff   :  { %2325 = vmatpush3.msra.mxu1 %v2623_v6 }
0x1b00   :  { %2326 = vmatprep.subr.mxu1 %v2556_v4 }
0x1b01   :  { %2327 = vmatpush3.msra.mxu1 %v2633_v7 }
0x1b02   :  { %2342 = vmatprep.subr.mxu1 %v2556_v4 }
0x1bba   :  { %v1236_v41 = vpop.f32.mrf.mxu1 }
0x1bbb   :  { %v1237_v42 = vadd.f32 %v1236_v41, %v1164_v40  ;;  %v2533_v40 = vld [vmem:[%s2976_s2] sm:$0xff]  ;;  %v1470_v41 = vld [vmem:[#allocation2 + $0x1a] sm:$0x3] }
0x1bbc   :  { %v2308_v43 = vpop.f32.mrf.mxu1 }
0x1bbd   :  { %2482 = vtanh.f32 %v1237_v42  ;;  %v2065_v45 = vmul.f32 -1.442695, %v1237_v42 }
0x1bbf   :  { %2484 = vpow2.f32 %v2065_v45 }
0x1bca   :  { %v2483_v44 = vpop.eup %2482 }
0x1bcb   :  { %1249 = vrot.lane.b32.xlu0 %v2483_v44, %s2558_s12 }
0x1bcc   :  { %v2485_v46 = vpop.eup %2484 }
0x1bcd   :  { %v1243_v47 = vadd.f32 1.0, %v2485_v46 }
0x1bcf   :  { %2486 = vrcp.f32 %v1243_v47 }
0x1bdc   :  { %v2487_v48 = vpop.eup %2486 }
0x1bdd   :  { %v1247_v51 = vmul.f32 %v2487_v48, %v1155_v33 }
0x1c3d   :  { %v1250_v49 = vpop.permute.xlu0 %1249 }
0x1c3e   :  { %v1252_v50 = vmul.f32 %v2487_v48, %v1250_v49 }
0x1c40   :  { %1254 = vrot.lane.b32.xlu1 %v1252_v50, %s2559_s3 }
0x1cb2   :  { %v1255_v52 = vpop.permute.xlu1 %1254 }
0x1cb3   :  { %v1257_v53 = vadd.f32 %v1255_v52, %v1247_v51 }
0x1cb5   :  { %2488 = vtanh.f32 %v1257_v53 }
0x1cc2   :  { %v2489_v54 = vpop.eup %2488 }
0x1cc3   :  { %1260 = vrot.lane.b32.xlu0 %v2489_v54, %s2558_s12 }
0x1d35   :  { %v1261_v55 = vpop.permute.xlu0 %1260 }
0x1d36   :  { %v1263_v56 = vmul.f32 %v2487_v48, %v1261_v55 }
0x1d38   :  { %v2841_v57 = vmax.f32 %v1162_v37, %v1263_v56  ;;  %v1265_v58 = vadd.f32 %v1263_v56, %v1163_v38  ;;  %1268 = vrot.lane.b32.xlu1 %v1263_v56, %s2559_s3  ;;  %v2530_v37 = vld [vmem:[%s2976_s2 + $0x18] sm:$0xff]  ;;  %v2531_v38 = vld [vmem:[%s2976_s2 + $0x10] sm:$0xff] }
0x1daa   :  { %v1269_v59 = vpop.permute.xlu1 %1268 }
0x1dab   :  { %2318 = vmatmul.mubr.msk.f32.vlgmr.msra.gmra.mxu0 %vm147_vm3, %v1269_v59 }
0x1dac   :  { %2332 = vmatpush3.msra.mxu0 %v2609_v3  ;;  %2339 = vmatprep.mubr.msk.f32.mxu0 %vm2557_vm2, %v2556_v4 }
0x1dad   :  { %2333 = vmatprep.subr.mxu0 %v2556_v4 }
0x1dae   :  { %2334 = vmatpush3.msra.mxu0 %v2615_v5 }
0x1daf   :  { %2335 = vmatprep.subr.mxu0 %v2556_v4 }
0x1db0   :  { %2336 = vmatpush3.msra.mxu0 %v2623_v6 }
0x1db1   :  { %2337 = vmatprep.subr.mxu0 %v2556_v4 }
0x1db2   :  { %2338 = vmatpush3.msra.mxu0 %v2633_v7 }
0x1db3   :  { %2353 = vmatprep.subr.mxu0 %v2556_v4 }
0x1e6b   :  { %v1338_v61 = vpop.f32.mrf.mxu0 }
0x1e6c   :  { %v1339_v62 = vadd.f32 %v1338_v61, %v1266_v60  ;;  %v1572_v61 = vld [vmem:[#allocation2 + $0x1c] sm:$0x3] }
0x1e6d   :  { %v2319_v63 = vpop.f32.mrf.mxu0 }
0x1e6e   :  { %2490 = vtanh.f32 %v1339_v62  ;;  %v2067_v1 = vmul.f32 -1.442695, %v1339_v62 }
0x1e70   :  { %2492 = vpow2.f32 %v2067_v1 }
0x1e7b   :  { %v2491_v0 = vpop.eup %2490 }
0x1e7c   :  { %1351 = vrot.lane.b32.xlu0 %v2491_v0, %s2558_s12 }
0x1e7d   :  { %v2493_v2 = vpop.eup %2492 }
0x1e7e   :  { %v1345_v8 = vadd.f32 1.0, %v2493_v2 }
0x1e80   :  { %2494 = vrcp.f32 %v1345_v8 }
0x1e8d   :  { %v2495_v9 = vpop.eup %2494 }
0x1e8e   :  { %v1349_v12 = vmul.f32 %v2495_v9, %v1257_v53 }
0x1eee   :  { %v1352_v10 = vpop.permute.xlu0 %1351 }
0x1eef   :  { %v1354_v11 = vmul.f32 %v2495_v9, %v1352_v10 }
0x1ef1   :  { %1356 = vrot.lane.b32.xlu1 %v1354_v11, %s2559_s3 }
0x1f63   :  { %v1357_v13 = vpop.permute.xlu1 %1356 }
0x1f64   :  { %v1359_v14 = vadd.f32 %v1357_v13, %v1349_v12 }
0x1f66   :  { %2496 = vtanh.f32 %v1359_v14 }
0x1f73   :  { %v2497_v15 = vpop.eup %2496 }
0x1f74   :  { %1362 = vrot.lane.b32.xlu0 %v2497_v15, %s2558_s12 }
0x1fe6   :  { %v1363_v16 = vpop.permute.xlu0 %1362 }
0x1fe7   :  { %v1365_v17 = vmul.f32 %v2495_v9, %v1363_v16 }
0x1fe9   :  { %v1366_v18 = vmax.f32 %v2841_v57, %v1365_v17  ;;  %v1367_v19 = vadd.f32 %v1365_v17, %v1265_v58  ;;  %1370 = vrot.lane.b32.xlu1 %v1365_v17, %s2559_s3 }
0x205b   :  { %v1371_v20 = vpop.permute.xlu1 %1370 }
0x205c   :  { %2329 = vmatmul.mubr.msk.f32.vlgmr.msra.gmra.mxu1 %vm147_vm3, %v1371_v20 }
0x205d   :  { %2343 = vmatpush3.msra.mxu1 %v2609_v3  ;;  %2350 = vmatprep.mubr.msk.f32.mxu1 %vm2557_vm2, %v2556_v4 }
0x205e   :  { %2344 = vmatprep.subr.mxu1 %v2556_v4 }
0x205f   :  { %2345 = vmatpush3.msra.mxu1 %v2615_v5 }
0x2060   :  { %2346 = vmatprep.subr.mxu1 %v2556_v4 }
0x2061   :  { %2347 = vmatpush3.msra.mxu1 %v2623_v6 }
0x2062   :  { %2348 = vmatprep.subr.mxu1 %v2556_v4 }
0x2063   :  { %2349 = vmatpush3.msra.mxu1 %v2633_v7 }
0x2064   :  { %2364 = vmatprep.subr.mxu1 %v2556_v4 }
0x211c   :  { %v1440_v22 = vpop.f32.mrf.mxu1 }
0x211d   :  { %v1441_v3 = vadd.f32 %v1440_v22, %v1368_v21  ;;  %v1674_v22 = vld [vmem:[#allocation2 + $0x1e] sm:$0x3] }
0x211e   :  { %v2330_v23 = vpop.f32.mrf.mxu1 }
0x211f   :  { %2498 = vtanh.f32 %v1441_v3  ;;  %v2069_v25 = vmul.f32 -1.442695, %v1441_v3 }
0x2121   :  { %2500 = vpow2.f32 %v2069_v25 }
0x212c   :  { %v2499_v24 = vpop.eup %2498 }
0x212d   :  { %1453 = vrot.lane.b32.xlu0 %v2499_v24, %s2558_s12 }
0x212e   :  { %v2501_v5 = vpop.eup %2500 }
0x212f   :  { %v1447_v26 = vadd.f32 1.0, %v2501_v5 }
0x2131   :  { %2502 = vrcp.f32 %v1447_v26 }
0x213e   :  { %v2503_v6 = vpop.eup %2502 }
0x213f   :  { %v1451_v7 = vmul.f32 %v2503_v6, %v1359_v14 }
0x219f   :  { %v1454_v27 = vpop.permute.xlu0 %1453 }
0x21a0   :  { %v1456_v28 = vmul.f32 %v2503_v6, %v1454_v27 }
0x21a2   :  { %1458 = vrot.lane.b32.xlu1 %v1456_v28, %s2559_s3 }
0x2214   :  { %v1459_v29 = vpop.permute.xlu1 %1458 }
0x2215   :  { %v1461_v30 = vadd.f32 %v1459_v29, %v1451_v7 }
0x2217   :  { %2504 = vtanh.f32 %v1461_v30 }
0x2224   :  { %v2505_v31 = vpop.eup %2504 }
0x2225   :  { %1464 = vrot.lane.b32.xlu0 %v2505_v31, %s2558_s12 }
0x2297   :  { %v1465_v32 = vpop.permute.xlu0 %1464 }
0x2298   :  { %v1467_v33 = vmul.f32 %v2503_v6, %v1465_v32  ;;  %v1780_v32 = vld [vmem:[%s2978_s4 + $0x18] sm:$0xff] }
0x229a   :  { %v2874_v34 = vmax.f32 %v1366_v18, %v1467_v33  ;;  %v1469_v35 = vadd.f32 %v1467_v33, %v1367_v19  ;;  %1472 = vrot.lane.b32.xlu1 %v1467_v33, %s2559_s3  ;;  %v1784_v33 = vld [vmem:[%s2978_s4 + $0x38] sm:$0xff] }
0x230c   :  { %v1473_v36 = vpop.permute.xlu1 %1472 }
0x230d   :  { %2340 = vmatmul.mubr.msk.f32.vlgmr.msra.gmra.mxu0 %vm147_vm3, %v1473_v36  ;;  %v1778_v36 = vld [vmem:[%s2978_s4 + $0x8] sm:$0xff] }
0x230e   :  { %2354 = vmatpush3.msra.mxu0 %v2530_v37  ;;  %2361 = vmatprep.mubr.msk.f32.mxu0 %vm2557_vm2, %v2556_v4  ;;  %v1782_v37 = vld [vmem:[%s2978_s4 + $0x28] sm:$0xff] }
0x230f   :  { %2355 = vmatprep.subr.mxu0 %v2556_v4 }
0x2310   :  { %2356 = vmatpush3.msra.mxu0 %v2531_v38 }
0x2311   :  { %2357 = vmatprep.subr.mxu0 %v2556_v4 }
0x2312   :  { %2358 = vmatpush3.msra.mxu0 %v2532_v39  ;;  %v1777_v39 = vld [vmem:[%s2978_s4] sm:$0xff] }
0x2313   :  { %2359 = vmatprep.subr.mxu0 %v2556_v4 }
0x2314   :  { %2360 = vmatpush3.msra.mxu0 %v2533_v40  ;;  %v1781_v40 = vld [vmem:[%s2978_s4 + $0x20] sm:$0xff] }
0x2315   :  { %2375 = vmatprep.subr.mxu0 %v2556_v4 }
0x23cd   :  { %v1542_v42 = vpop.f32.mrf.mxu0 }
0x23ce   :  { %v1543_v43 = vadd.f32 %v1542_v42, %v1470_v41 }
0x23cf   :  { %v2341_v44 = vpop.f32.mrf.mxu0 }
0x23d0   :  { %2506 = vtanh.f32 %v1543_v43  ;;  %v2071_v46 = vmul.f32 -1.442695, %v1543_v43 }
0x23d2   :  { %2508 = vpow2.f32 %v2071_v46 }
0x23dd   :  { %v2507_v45 = vpop.eup %2506 }
0x23de   :  { %1555 = vrot.lane.b32.xlu0 %v2507_v45, %s2558_s12 }
0x23df   :  { %v2509_v47 = vpop.eup %2508 }
0x23e0   :  { %v1549_v48 = vadd.f32 1.0, %v2509_v47  ;;  %v1938_v47 = vld [vmem:[%s2978_s4 + $0x58] sm:$0xff] }
0x23e2   :  { %2510 = vrcp.f32 %v1549_v48 }
0x23ef   :  { %v2511_v49 = vpop.eup %2510 }
0x23f0   :  { %v1553_v52 = vmul.f32 %v2511_v49, %v1461_v30 }
0x2450   :  { %v1556_v50 = vpop.permute.xlu0 %1555 }
0x2451   :  { %v1558_v51 = vmul.f32 %v2511_v49, %v1556_v50  ;;  %v1936_v50 = vld [vmem:[%s2978_s4 + $0x48] sm:$0xff] }
0x2453   :  { %1560 = vrot.lane.b32.xlu1 %v1558_v51, %s2559_s3  ;;  %v1935_v51 = vld [vmem:[%s2978_s4 + $0x40] sm:$0xff] }
0x24c5   :  { %v1561_v53 = vpop.permute.xlu1 %1560 }
0x24c6   :  { %v1563_v54 = vadd.f32 %v1561_v53, %v1553_v52 }
0x24c8   :  { %2512 = vtanh.f32 %v1563_v54 }
0x24d5   :  { %v2513_v55 = vpop.eup %2512 }
0x24d6   :  { %1566 = vrot.lane.b32.xlu0 %v2513_v55, %s2558_s12 }
0x2548   :  { %v1567_v56 = vpop.permute.xlu0 %1566 }
0x2549   :  { %v1569_v57 = vmul.f32 %v2511_v49, %v1567_v56  ;;  %v1937_v49 = vld [vmem:[%s2978_s4 + $0x50] sm:$0xff] }
0x254b   :  { %v1570_v58 = vmax.f32 %v2874_v34, %v1569_v57  ;;  %v1571_v59 = vadd.f32 %v1569_v57, %v1469_v35  ;;  %1574 = vrot.lane.b32.xlu1 %v1569_v57, %s2559_s3  ;;  %v1779_v34 = vld [vmem:[%s2978_s4 + $0x10] sm:$0xff] }
0x254c   :  { %v1783_v35 = vld [vmem:[%s2978_s4 + $0x30] sm:$0xff]  ;;  %s2534_s4 = scalar_lea.vmem %s2032_s23, 32 }
0x254d   :  { %p2535_p0 = scmp.ne.s32.totalorder %s2032_s23, %s2534_s4  ;;  %p2540_p2 = scmp.lt.s32.totalorder %s2534_s4, %s2534_s4 }
0x254f   :  { %p2541_p3 = por %p2540_p2, %p2539_p1 }
0x2551   :  { %p2542_p4 = pnand %p2541_p3, %p2535_p0 }
0x25bd   :  { %v1575_v60 = vpop.permute.xlu1 %1574 }
0x25be   :  { %2351 = vmatmul.mubr.msk.f32.vlgmr.msra.gmra.mxu1 %vm147_vm3, %v1575_v60 }
0x25bf   :  { %2372 = vmatprep.mubr.msk.f32.mxu1 %vm2557_vm2, %v2556_v4  ;;  %2365 = vmatpush3.msra.mxu1 %v1784_v33 }
0x25c0   :  { %2366 = vmatprep.subr.mxu1 %v2556_v4 }
0x25c1   :  { %2367 = vmatpush3.msra.mxu1 %v1783_v35 }
0x25c2   :  { %2368 = vmatprep.subr.mxu1 %v2556_v4 }
0x25c3   :  { %2369 = vmatpush3.msra.mxu1 %v1782_v37 }
0x25c4   :  { %2370 = vmatprep.subr.mxu1 %v2556_v4 }
0x25c5   :  { %2371 = vmatpush3.msra.mxu1 %v1781_v40 }
0x25c6   :  { %2386 = vmatprep.subr.mxu1 %v2556_v4 }
0x267e   :  { %v1644_v62 = vpop.f32.mrf.mxu1 }
0x267f   :  { %v1645_v63 = vadd.f32 %v1644_v62, %v1572_v61 }
0x2680   :  { %v2352_v0 = vpop.f32.mrf.mxu1 }
0x2681   :  { %2514 = vtanh.f32 %v1645_v63  ;;  %v2073_v2 = vmul.f32 -1.442695, %v1645_v63 }
0x2683   :  { %2516 = vpow2.f32 %v2073_v2 }
0x268e   :  { %v2515_v1 = vpop.eup %2514 }
0x268f   :  { %1657 = vrot.lane.b32.xlu0 %v2515_v1, %s2558_s12 }
0x2690   :  { %v2517_v8 = vpop.eup %2516 }
0x2691   :  { %v1651_v9 = vadd.f32 1.0, %v2517_v8 }
0x2693   :  { %2518 = vrcp.f32 %v1651_v9 }
0x26a0   :  { %v2519_v10 = vpop.eup %2518 }
0x26a1   :  { %v1655_v13 = vmul.f32 %v2519_v10, %v1563_v54 }
0x2701   :  { %v1658_v11 = vpop.permute.xlu0 %1657 }
0x2702   :  { %v1660_v12 = vmul.f32 %v2519_v10, %v1658_v11 }
0x2704   :  { %1662 = vrot.lane.b32.xlu1 %v1660_v12, %s2559_s3 }
0x2776   :  { %v1663_v14 = vpop.permute.xlu1 %1662 }
0x2777   :  { %v1665_v15 = vadd.f32 %v1663_v14, %v1655_v13 }
0x2779   :  { %2520 = vtanh.f32 %v1665_v15 }
0x2786   :  { %v2521_v16 = vpop.eup %2520 }
0x2787   :  { %1668 = vrot.lane.b32.xlu0 %v2521_v16, %s2558_s12 }
0x27f9   :  { %v1669_v17 = vpop.permute.xlu0 %1668 }
0x27fa   :  { %v1671_v18 = vmul.f32 %v2519_v10, %v1669_v17 }
0x27fc   :  { %v1672_v19 = vmax.f32 %v1570_v58, %v1671_v18  ;;  %v1673_v20 = vadd.f32 %v1671_v18, %v1571_v59  ;;  %1676 = vrot.lane.b32.xlu1 %v1671_v18, %s2559_s3  ;;  %v2079_v59 = vld [vmem:[%s2979_s5] ss:$0 sm:$0xff] }
0x286e   :  { %v1677_v21 = vpop.permute.xlu1 %1676 }
0x286f   :  { %2362 = vmatmul.mubr.msk.f32.vlgmr.msra.gmra.mxu0 %vm147_vm3, %v1677_v21 }
0x2870   :  { %2383 = vmatprep.mubr.msk.f32.mxu0 %vm2557_vm2, %v2556_v4  ;;  %2376 = vmatpush3.msra.mxu0 %v1780_v32 }
0x2871   :  { %2377 = vmatprep.subr.mxu0 %v2556_v4 }
0x2872   :  { %2378 = vmatpush3.msra.mxu0 %v1779_v34 }
0x2873   :  { %2379 = vmatprep.subr.mxu0 %v2556_v4 }
0x2874   :  { %2380 = vmatpush3.msra.mxu0 %v1778_v36 }
0x2875   :  { %2381 = vmatprep.subr.mxu0 %v2556_v4 }
0x2876   :  { %2382 = vmatpush3.msra.mxu0 %v1777_v39 }
0x292f   :  { %v1746_v3 = vpop.f32.mrf.mxu0 }
0x2930   :  { %v1747_v23 = vadd.f32 %v1746_v3, %v1674_v22 }
0x2931   :  { %v2363_v24 = vpop.f32.mrf.mxu0 }
0x2932   :  { %2522 = vtanh.f32 %v1747_v23  ;;  %v2075_v5 = vmul.f32 -1.442695, %v1747_v23 }
0x2934   :  { %2524 = vpow2.f32 %v2075_v5 }
0x293f   :  { %v2523_v25 = vpop.eup %2522 }
0x2940   :  { %1759 = vrot.lane.b32.xlu0 %v2523_v25, %s2558_s12 }
0x2941   :  { %v2525_v26 = vpop.eup %2524 }
0x2942   :  { %v1753_v6 = vadd.f32 1.0, %v2525_v26 }
0x2944   :  { %2526 = vrcp.f32 %v1753_v6 }
0x2951   :  { %v2527_v27 = vpop.eup %2526 }
0x2952   :  { %v1757_v29 = vmul.f32 %v2527_v27, %v1665_v15 }
0x29b2   :  { %v1760_v28 = vpop.permute.xlu0 %1759 }
0x29b3   :  { %v1762_v7 = vmul.f32 %v2527_v27, %v1760_v28 }
0x29b5   :  { %1764 = vrot.lane.b32.xlu1 %v1762_v7, %s2559_s3 }
0x2a27   :  { %v1765_v30 = vpop.permute.xlu1 %1764 }
0x2a28   :  { %v1767_v31 = vadd.f32 %v1765_v30, %v1757_v29 }
0x2a2a   :  { %2528 = vtanh.f32 %v1767_v31 }
0x2a37   :  { %v2529_v38 = vpop.eup %2528 }
0x2a38   :  { %1770 = vrot.lane.b32.xlu0 %v2529_v38, %s2558_s12 }
0x2aaa   :  { %v1771_v41 = vpop.permute.xlu0 %1770 }
0x2aab   :  { %v1773_v42 = vmul.f32 %v2527_v27, %v1771_v41 }
0x2aad   :  { %1861 = vrot.lane.b32.xlu0 %v1773_v42, %s2559_s3  ;;  %v1774_v43 = vmax.f32 %v1672_v19, %v1773_v42  ;;  %v1775_v44 = vadd.f32 %v1773_v42, %v1673_v20 }
0x2aaf   :  { %1786 = vrot.lane.b32.xlu1 %v1774_v43, %s2559_s3  ;;  %v1776_v45 = vmul.f32 0.0625, %v1775_v44 }
0x2ab3   :  { %1940 = vrot.lane.b32.xlu1 %v1776_v45, %s2559_s3 }
0x2b1f   :  { %v1862_v46 = vpop.permute.xlu0 %1861 }
0x2b20   :  { %2384 = vmatmul.mubr.msk.f32.vlgmr.msra.gmra.mxu0 %vm147_vm3, %v1862_v46 }
0x2b21   :  { %v1787_v48 = vpop.permute.xlu1 %1786 }
0x2b22   :  { %2373 = vmatmul.mubr.msk.f32.vlgmr.msra.gmra.mxu1 %vm147_vm3, %v1787_v48 }
0x2b23   :  { %2387 = vmatpush3.msra.mxu1 %v1938_v47  ;;  %2394 = vmatprep.mubr.msk.f32.mxu1 %vm2557_vm2, %v2556_v4 }
0x2b24   :  { %2388 = vmatprep.subr.mxu1 %v2556_v4 }
0x2b25   :  { %2389 = vmatpush3.msra.mxu1 %v1937_v49  ;;  %v1941_v52 = vpop.permute.xlu1 %1940 }
0x2b26   :  { %2390 = vmatprep.subr.mxu1 %v2556_v4 }
0x2b27   :  { %2391 = vmatpush3.msra.mxu1 %v1936_v50 }
0x2b28   :  { %2392 = vmatprep.subr.mxu1 %v2556_v4 }
0x2b29   :  { %2393 = vmatpush3.msra.mxu1 %v1935_v51 }
0x2b2a   :  { %2395 = vmatmul.mubr.msk.f32.vlgmr.msra.gmra.mxu1 %vm147_vm3, %v1941_v52 }
0x2be0   :  { %v1931_v53 = vpop.f32.mrf.mxu0 }
0x2be2   :  { %v1856_v54 = vpop.f32.mrf.mxu1  ;;  %v2385_v55 = vpop.f32.mrf.mxu0 }
0x2be3   :  { %v1932_v57 = vadd.f32 %v1931_v53, %v1856_v54 }
0x2be4   :  { %v2374_v56 = vpop.f32.mrf.mxu1 }
0x2bea   :  { %v2010_v58 = vpop.f32.mrf.mxu1 }
0x2beb   :  { %v2014_v60 = vadd.f32 %v2010_v58, %v1932_v57 }
0x2bec   :  { %v2396_v61 = vpop.f32.mrf.mxu1 }
0x2bed   :  { %v2022_v4 = vadd.f32 %v2079_v59, %v2014_v60 }
0x2bef   :  { %2024 = vst.msk [vmem:[#allocation3] sm:$0x3] %vm2023_vm4, %v2022_v4 }
0x2bf0   :  { %2545 = shalt.err (!%p2542_p4)
}
0x2bf1   :  { %2034 = dma.vmem_to_hbm [thread:$0]  %s2032_s23, 32, %s2980_s6, [#allocation4]  }
0x2bf2   :  { %2554 = dma.done.wait [#allocation4], 32  }
0x2bf3   :  { %2555 = vsyncadd [#allocation4], 4294967264 }
0x2bf4   :  { %2038 = vsyncpa [#allocation4], 1 }

</bundles_post_ra>
